<compile_context>
chip_gen: v7x
topology: tpu7x:2x2x1
jax: 0.10.0
libtpu: 0.0.40
codegen_flags: <defaults>
</compile_context>

<pallas_src>
import functools

import jax
import jax.numpy as jnp
from jax import lax
from jax.experimental import pallas as pl
from jax.experimental.pallas import tpu as pltpu


def _lsa_kernel(x_ref, wqkv_ref, wo_ref, bo_ref, o_ref,
                q_s, k_s, v_s, *, heads, dim_head, block_b):
    n = x_ref.shape[1]
    inner = heads * dim_head

    # Hoisted once per grid step (weights / bias / mask are reused for every
    # batch element in this block).
    wqkv = wqkv_ref[...]                        # (dim, 3*inner) bf16, Wq pre-scaled
    wo3 = wo_ref[...]                           # (heads, dim_head, dim) bf16
    bo = bo_ref[...]                            # (1, dim) f32

    # LSA diagonal mask as an additive (1, n, n) term, broadcast over heads.
    # (Equivalent to masked_fill(-finfo.max) for finite logits.)
    row = lax.broadcasted_iota(jnp.int32, (n, n), 0)
    col = lax.broadcasted_iota(jnp.int32, (n, n), 1)
    neg_diag = jnp.where(row == col, jnp.finfo(jnp.float32).min, 0.0)[None]

    for bi in range(block_b):                   # unrolled; block_b is small
        xb = x_ref[bi]                          # (n, dim) bf16

        # ---- Fused, lane-dense QKV projection: one MXU matmul, N = 3*inner.
        qkv = jnp.dot(xb, wqkv, preferred_element_type=jnp.float32)
        qkv = qkv.astype(jnp.bfloat16)          # (n, 3*inner)

        # ---- One-time relayout to head-major staging for the head-batched
        # attention dot_generals (dim_head=16 pads to 128 lanes; small at LSA
        # sequence lengths).
        for h in range(heads):
            lo = h * dim_head
            q_s[h] = qkv[:, lo:lo + dim_head]
            k_s[h] = qkv[:, inner + lo:inner + lo + dim_head]
            v_s[h] = qkv[:, 2 * inner + lo:2 * inner + lo + dim_head]
        q3 = q_s[...]                           # (heads, n, dh) bf16
        k3 = k_s[...]
        v3 = v_s[...]

        # ---- Head-batched attention logits (scale already folded into Wq).
        dots = lax.dot_general(q3, k3, (((2,), (2,)), ((0,), (0,))),
                               preferred_element_type=jnp.float32)  # (heads,n,n)
        dots = dots + neg_diag

        # ---- Softmax in f32; EUP reciprocal for the normalization.
        m = jnp.max(dots, axis=-1, keepdims=True)
        e = jnp.exp(dots - m)
        l = jnp.sum(e, axis=-1, keepdims=True)
        attn = e * pl.reciprocal(l, approx=True)

        # ---- attn @ V, head-batched, f32 accumulation.
        ctx = lax.dot_general(attn.astype(jnp.bfloat16), v3,
                              (((2,), (1,)), ((0,), (0,))),
                              preferred_element_type=jnp.float32)   # (heads,n,dh)

        # ---- Fused output projection: per-head (n, dh) @ (dh, dim) batched on
        # the MXU, then summed over heads (== concat_h(ctx_h) @ Wo).  No
        # per-head packing stores, no (n, inner) scratch round trip.
        outs = lax.dot_general(ctx.astype(jnp.bfloat16), wo3,
                               (((2,), (1,)), ((0,), (0,))),
                               preferred_element_type=jnp.float32)  # (heads,n,dim)
        out = bo + outs[0]
        for h in range(1, heads):
            out = out + outs[h]

        # TODO(synk): nn.Dropout(p=0.0) is the identity; no stochastic dropout.
        o_ref[bi] = out.astype(o_ref.dtype)


def _pick_block_b(b, n):
    """Largest divisor of b with block_b*n <= 256 rows, keeping >= 2 grid steps
    when b >= 2 (so both v7x TensorCores get work via the 'parallel' axis)."""
    best = 1
    for cand in range(1, b + 1):
        if b % cand:
            continue
        if cand * n > 256:
            break
        if b >= 2 and b // cand < 2:
            continue
        best = cand
    return best


def lsa_forward(x, params, *, heads, dim_head, block_b=None,
                out_dtype=jnp.bfloat16):
    """x: (b, n, dim).  Returns (b, n, dim) in `out_dtype` (bf16 by default to
    halve HBM writeback; cast outside if f32 is required downstream)."""
    b, n, dim = x.shape
    inner = heads * dim_head
    if block_b is None:
        block_b = _pick_block_b(b, n)
    assert b % block_b == 0, "batch must be a multiple of block_b"
    grid = (b // block_b,)

    scale = jnp.exp(params["temperature"]).astype(jnp.float32)

    # Fused QKV weight (dim, 3*inner) with the attention scale folded into Wq
    # (exactly equivalent to scaling the logits).  bf16 MXU operands.
    wqkv = jnp.concatenate(
        [params["wq_t"] * scale, params["wk_t"], params["wv_t"]],
        axis=1).astype(jnp.bfloat16)
    # Output projection split per head: (inner, dim) -> (heads, dim_head, dim).
    wo3 = params["wo_t"].reshape(heads, dim_head, dim).astype(jnp.bfloat16)
    bo = params["bo"].astype(jnp.float32).reshape(1, dim)
    xb = x.astype(jnp.bfloat16)

    kernel = functools.partial(_lsa_kernel, heads=heads, dim_head=dim_head,
                               block_b=block_b)

    # Note: weight/bias blocks have constant index maps; on v7x (64 MiB VMEM)
    # they could additionally be single-buffered (pipeline_mode=pl.Buffered(1))
    # — at these sizes the saving is negligible, so it is left at the default.
    return pl.pallas_call(
        kernel,
        out_shape=jax.ShapeDtypeStruct((b, n, dim), out_dtype),
        grid_spec=pltpu.PrefetchScalarGridSpec(
            num_scalar_prefetch=0,
            grid=grid,
            in_specs=[
                pl.BlockSpec((block_b, n, dim), lambda i: (i, 0, 0)),       # x (single stream)
                pl.BlockSpec((dim, 3 * inner), lambda i: (0, 0)),           # Wqkv (Wq pre-scaled)
                pl.BlockSpec((heads, dim_head, dim), lambda i: (0, 0, 0)),  # Wo (head-split)
                pl.BlockSpec((1, dim), lambda i: (0, 0)),                   # bo
            ],
            out_specs=pl.BlockSpec((block_b, n, dim), lambda i: (i, 0, 0)),
            scratch_shapes=[
                pltpu.VMEM((heads, n, dim_head), jnp.bfloat16),   # q (head-major staging)
                pltpu.VMEM((heads, n, dim_head), jnp.bfloat16),   # k
                pltpu.VMEM((heads, n, dim_head), jnp.bfloat16),   # v
            ],
        ),
        compiler_params=pltpu.CompilerParams(
            dimension_semantics=("parallel",)),
    )(xb, wqkv, wo3, bo)


def reference_lsa(x, params, *, heads, dim_head):
    """Pure-JAX (f32) reference mirroring the PyTorch LSA forward."""
    b, n, dim = x.shape
    inner = heads * dim_head
    scale = jnp.exp(params["temperature"]).astype(jnp.float32)
    xf = x.astype(jnp.float32)
    q = xf @ params["wq_t"]
    k = xf @ params["wk_t"]
    v = xf @ params["wv_t"]

    def split(t):  # (b, n, h*d) -> (b, h, n, d)
        return t.reshape(b, n, heads, dim_head).transpose(0, 2, 1, 3)

    q, k, v = split(q), split(k), split(v)
    dots = jnp.einsum("bhid,bhjd->bhij", q, k) * scale
    eye = jnp.eye(n, dtype=bool)[None, None]
    dots = jnp.where(eye, jnp.finfo(jnp.float32).min, dots)
    attn = jax.nn.softmax(dots, axis=-1)
    out = jnp.einsum("bhij,bhjd->bhid", attn, v)
    out = out.transpose(0, 2, 1, 3).reshape(b, n, inner)
    return out @ params["wo_t"] + params["bo"]


def init_params(key, dim, heads, dim_head):
    inner = heads * dim_head
    ks = jax.random.split(key, 5)
    return {
        # Pre-transposed linear weights (PyTorch stores (out, in); we pass (in, out)).
        "wq_t": jax.random.normal(ks[0], (dim, inner), jnp.float32) / jnp.sqrt(dim),
        "wk_t": jax.random.normal(ks[1], (dim, inner), jnp.float32) / jnp.sqrt(dim),
        "wv_t": jax.random.normal(ks[2], (dim, inner), jnp.float32) / jnp.sqrt(dim),
        "wo_t": jax.random.normal(ks[3], (inner, dim), jnp.float32) / jnp.sqrt(inner),
        "bo": jax.random.normal(ks[4], (1, dim), jnp.float32) * 0.01,
        # Learnable scalar: temperature = log(dim_head^-0.5)  ->  exp = dim_head^-0.5.
        "temperature": jnp.log(jnp.asarray(dim_head, jnp.float32) ** -0.5),
    }


if __name__ == "__main__":
    B, N, DIM = 4, 8, 32
    HEADS, DIM_HEAD = 4, 16

    key = jax.random.PRNGKey(0)
    kx, kp = jax.random.split(key)
    x = jax.random.normal(kx, (B, N, DIM), jnp.float32)
    params = init_params(kp, DIM, HEADS, DIM_HEAD)

    # The kernel feeds bf16 operands to the MXU; compare against an f32
    # reference computed from identically bf16-quantized inputs so the check
    # isolates kernel correctness rather than input-quantization error.
    def q_bf16(t):
        return t.astype(jnp.bfloat16).astype(jnp.float32)

    x_q = q_bf16(x)
    params_q = {k: (q_bf16(v) if k.startswith("w") else v) for k, v in params.items()}

    out = lsa_forward(x_q, params_q, heads=HEADS, dim_head=DIM_HEAD)  # block_b=2, grid=(2,)
    out = jax.block_until_ready(out)

    ref = reference_lsa(x_q, params_q, heads=HEADS, dim_head=DIM_HEAD)
    assert out.shape == (B, N, DIM)
    assert jnp.allclose(out.astype(jnp.float32), ref, rtol=2e-2, atol=2e-2), \
        "mismatch vs JAX reference"

    print("KERNEL_OK")
</pallas_src>

<mosaic_0001>
module attributes {stable_mosaic.version = 11 : i64} {
  func.func @_lsa_kernel(%arg0: i32, %arg1: memref<2x8x32xbf16, #tpu.memory_space<vmem>>, %arg2: memref<32x192xbf16, #tpu.memory_space<vmem>>, %arg3: memref<4x16x32xbf16, #tpu.memory_space<vmem>>, %arg4: memref<1x32xf32, #tpu.memory_space<vmem>>, %arg5: memref<2x8x32xbf16, #tpu.memory_space<vmem>>, %arg6: memref<4x8x16xbf16, #tpu.memory_space<vmem>>, %arg7: memref<4x8x16xbf16, #tpu.memory_space<vmem>>, %arg8: memref<4x8x16xbf16, #tpu.memory_space<vmem>>) attributes {dimension_semantics = [#tpu.dimension_semantics<parallel>], iteration_bounds = array<i64: 2>, scalar_prefetch = 0 : i64, scratch_operands = 3 : i64, tpu.core_type = #tpu.core_type<tc>, window_params = [{transform_indices = @transform_0, window_bounds = array<i64: 2, 8, 32>}, {pipeline_mode = #tpu.pipeline_mode<synchronous>, transform_indices = @transform_1, window_bounds = array<i64: 32, 192>}, {pipeline_mode = #tpu.pipeline_mode<synchronous>, transform_indices = @transform_2, window_bounds = array<i64: 4, 16, 32>}, {pipeline_mode = #tpu.pipeline_mode<synchronous>, transform_indices = @transform_3, window_bounds = array<i64: 1, 32>}, {transform_indices = @transform_4, window_bounds = array<i64: 2, 8, 32>}]} {
    %c0 = arith.constant 0 : index
    %c0_0 = arith.constant 0 : index
    %0 = vector.load %arg2[%c0, %c0_0] : memref<32x192xbf16, #tpu.memory_space<vmem>>, vector<32x192xbf16>
    %c0_1 = arith.constant 0 : index
    %c0_2 = arith.constant 0 : index
    %c0_3 = arith.constant 0 : index
    %1 = vector.load %arg3[%c0_1, %c0_2, %c0_3] : memref<4x16x32xbf16, #tpu.memory_space<vmem>>, vector<4x16x32xbf16>
    %c0_4 = arith.constant 0 : index
    %c0_5 = arith.constant 0 : index
    %2 = vector.load %arg4[%c0_4, %c0_5] : memref<1x32xf32, #tpu.memory_space<vmem>>, vector<1x32xf32>
    %3 = tpu.iota {dimensions = array<i32: 0>} : vector<8x8xi32>
    %4 = tpu.iota {dimensions = array<i32: 1>} : vector<8x8xi32>
    %5 = arith.cmpi eq, %3, %4 : vector<8x8xi32>
    %cst = arith.constant -3.40282347E+38 : f32
    %cst_6 = arith.constant 0.000000e+00 : f32
    %6 = vector.broadcast %cst : f32 to vector<8x8xf32>
    %7 = vector.broadcast %cst_6 : f32 to vector<8x8xf32>
    %8 = arith.select %5, %6, %7 : vector<8x8xi1>, vector<8x8xf32>
    %9 = vector.shape_cast %8 : vector<8x8xf32> to vector<1x8x8xf32>
    %c0_7 = arith.constant 0 : index
    %c0_8 = arith.constant 0 : index
    %c0_9 = arith.constant 0 : index
    %10 = vector.load %arg1[%c0_7, %c0_8, %c0_9] : memref<2x8x32xbf16, #tpu.memory_space<vmem>>, vector<1x8x32xbf16>
    %11 = vector.shape_cast %10 : vector<1x8x32xbf16> to vector<8x32xbf16>
    %cst_10 = arith.constant dense<0.000000e+00> : vector<8x192xf32>
    %12 = tpu.matmul %11, %0, %cst_10 {dimension_numbers = #tpu.dot_dimension_numbers<[1], [0], [0], [1], [0, 0, 1, 1], [], []>} : vector<8x32xbf16>, vector<32x192xbf16>, vector<8x192xf32> -> vector<8x192xf32>
    %13 = arith.truncf %12 : vector<8x192xf32> to vector<8x192xbf16>
    %14 = vector.extract_strided_slice %13 {offsets = [0, 0], sizes = [8, 16], strides = [1, 1]} : vector<8x192xbf16> to vector<8x16xbf16>
    %c0_11 = arith.constant 0 : index
    %c0_12 = arith.constant 0 : index
    %c0_13 = arith.constant 0 : index
    %15 = vector.load %arg6[%c0_11, %c0_12, %c0_13] : memref<4x8x16xbf16, #tpu.memory_space<vmem>>, vector<1x8x16xbf16>
    %16 = vector.shape_cast %15 : vector<1x8x16xbf16> to vector<8x16xbf16>
    %17 = vector.shape_cast %14 : vector<8x16xbf16> to vector<1x8x16xbf16>
    tpu.vector_store %arg6[%c0_11, %c0_12, %c0_13], %17 {strides = array<i32>} : memref<4x8x16xbf16, #tpu.memory_space<vmem>>, vector<1x8x16xbf16>,
    %18 = vector.extract_strided_slice %13 {offsets = [0, 64], sizes = [8, 16], strides = [1, 1]} : vector<8x192xbf16> to vector<8x16xbf16>
    %c0_14 = arith.constant 0 : index
    %c0_15 = arith.constant 0 : index
    %c0_16 = arith.constant 0 : index
    %19 = vector.load %arg7[%c0_14, %c0_15, %c0_16] : memref<4x8x16xbf16, #tpu.memory_space<vmem>>, vector<1x8x16xbf16>
    %20 = vector.shape_cast %19 : vector<1x8x16xbf16> to vector<8x16xbf16>
    %21 = vector.shape_cast %18 : vector<8x16xbf16> to vector<1x8x16xbf16>
    tpu.vector_store %arg7[%c0_14, %c0_15, %c0_16], %21 {strides = array<i32>} : memref<4x8x16xbf16, #tpu.memory_space<vmem>>, vector<1x8x16xbf16>,
    %22 = vector.extract_strided_slice %13 {offsets = [0, 128], sizes = [8, 16], strides = [1, 1]} : vector<8x192xbf16> to vector<8x16xbf16>
    %c0_17 = arith.constant 0 : index
    %c0_18 = arith.constant 0 : index
    %c0_19 = arith.constant 0 : index
    %23 = vector.load %arg8[%c0_17, %c0_18, %c0_19] : memref<4x8x16xbf16, #tpu.memory_space<vmem>>, vector<1x8x16xbf16>
    %24 = vector.shape_cast %23 : vector<1x8x16xbf16> to vector<8x16xbf16>
    %25 = vector.shape_cast %22 : vector<8x16xbf16> to vector<1x8x16xbf16>
    tpu.vector_store %arg8[%c0_17, %c0_18, %c0_19], %25 {strides = array<i32>} : memref<4x8x16xbf16, #tpu.memory_space<vmem>>, vector<1x8x16xbf16>,
    %26 = vector.extract_strided_slice %13 {offsets = [0, 16], sizes = [8, 16], strides = [1, 1]} : vector<8x192xbf16> to vector<8x16xbf16>
    %c1 = arith.constant 1 : index
    %c0_20 = arith.constant 0 : index
    %c0_21 = arith.constant 0 : index
    %27 = vector.load %arg6[%c1, %c0_20, %c0_21] : memref<4x8x16xbf16, #tpu.memory_space<vmem>>, vector<1x8x16xbf16>
    %28 = vector.shape_cast %27 : vector<1x8x16xbf16> to vector<8x16xbf16>
    %29 = vector.shape_cast %26 : vector<8x16xbf16> to vector<1x8x16xbf16>
    tpu.vector_store %arg6[%c1, %c0_20, %c0_21], %29 {strides = array<i32>} : memref<4x8x16xbf16, #tpu.memory_space<vmem>>, vector<1x8x16xbf16>,
    %30 = vector.extract_strided_slice %13 {offsets = [0, 80], sizes = [8, 16], strides = [1, 1]} : vector<8x192xbf16> to vector<8x16xbf16>
    %c1_22 = arith.constant 1 : index
    %c0_23 = arith.constant 0 : index
    %c0_24 = arith.constant 0 : index
    %31 = vector.load %arg7[%c1_22, %c0_23, %c0_24] : memref<4x8x16xbf16, #tpu.memory_space<vmem>>, vector<1x8x16xbf16>
    %32 = vector.shape_cast %31 : vector<1x8x16xbf16> to vector<8x16xbf16>
    %33 = vector.shape_cast %30 : vector<8x16xbf16> to vector<1x8x16xbf16>
    tpu.vector_store %arg7[%c1_22, %c0_23, %c0_24], %33 {strides = array<i32>} : memref<4x8x16xbf16, #tpu.memory_space<vmem>>, vector<1x8x16xbf16>,
    %34 = vector.extract_strided_slice %13 {offsets = [0, 144], sizes = [8, 16], strides = [1, 1]} : vector<8x192xbf16> to vector<8x16xbf16>
    %c1_25 = arith.constant 1 : index
    %c0_26 = arith.constant 0 : index
    %c0_27 = arith.constant 0 : index
    %35 = vector.load %arg8[%c1_25, %c0_26, %c0_27] : memref<4x8x16xbf16, #tpu.memory_space<vmem>>, vector<1x8x16xbf16>
    %36 = vector.shape_cast %35 : vector<1x8x16xbf16> to vector<8x16xbf16>
    %37 = vector.shape_cast %34 : vector<8x16xbf16> to vector<1x8x16xbf16>
    tpu.vector_store %arg8[%c1_25, %c0_26, %c0_27], %37 {strides = array<i32>} : memref<4x8x16xbf16, #tpu.memory_space<vmem>>, vector<1x8x16xbf16>,
    %38 = vector.extract_strided_slice %13 {offsets = [0, 32], sizes = [8, 16], strides = [1, 1]} : vector<8x192xbf16> to vector<8x16xbf16>
    %c2 = arith.constant 2 : index
    %c0_28 = arith.constant 0 : index
    %c0_29 = arith.constant 0 : index
    %39 = vector.load %arg6[%c2, %c0_28, %c0_29] : memref<4x8x16xbf16, #tpu.memory_space<vmem>>, vector<1x8x16xbf16>
    %40 = vector.shape_cast %39 : vector<1x8x16xbf16> to vector<8x16xbf16>
    %41 = vector.shape_cast %38 : vector<8x16xbf16> to vector<1x8x16xbf16>
    tpu.vector_store %arg6[%c2, %c0_28, %c0_29], %41 {strides = array<i32>} : memref<4x8x16xbf16, #tpu.memory_space<vmem>>, vector<1x8x16xbf16>,
    %42 = vector.extract_strided_slice %13 {offsets = [0, 96], sizes = [8, 16], strides = [1, 1]} : vector<8x192xbf16> to vector<8x16xbf16>
    %c2_30 = arith.constant 2 : index
    %c0_31 = arith.constant 0 : index
    %c0_32 = arith.constant 0 : index
    %43 = vector.load %arg7[%c2_30, %c0_31, %c0_32] : memref<4x8x16xbf16, #tpu.memory_space<vmem>>, vector<1x8x16xbf16>
    %44 = vector.shape_cast %43 : vector<1x8x16xbf16> to vector<8x16xbf16>
    %45 = vector.shape_cast %42 : vector<8x16xbf16> to vector<1x8x16xbf16>
    tpu.vector_store %arg7[%c2_30, %c0_31, %c0_32], %45 {strides = array<i32>} : memref<4x8x16xbf16, #tpu.memory_space<vmem>>, vector<1x8x16xbf16>,
    %46 = vector.extract_strided_slice %13 {offsets = [0, 160], sizes = [8, 16], strides = [1, 1]} : vector<8x192xbf16> to vector<8x16xbf16>
    %c2_33 = arith.constant 2 : index
    %c0_34 = arith.constant 0 : index
    %c0_35 = arith.constant 0 : index
    %47 = vector.load %arg8[%c2_33, %c0_34, %c0_35] : memref<4x8x16xbf16, #tpu.memory_space<vmem>>, vector<1x8x16xbf16>
    %48 = vector.shape_cast %47 : vector<1x8x16xbf16> to vector<8x16xbf16>
    %49 = vector.shape_cast %46 : vector<8x16xbf16> to vector<1x8x16xbf16>
    tpu.vector_store %arg8[%c2_33, %c0_34, %c0_35], %49 {strides = array<i32>} : memref<4x8x16xbf16, #tpu.memory_space<vmem>>, vector<1x8x16xbf16>,
    %50 = vector.extract_strided_slice %13 {offsets = [0, 48], sizes = [8, 16], strides = [1, 1]} : vector<8x192xbf16> to vector<8x16xbf16>
    %c3 = arith.constant 3 : index
    %c0_36 = arith.constant 0 : index
    %c0_37 = arith.constant 0 : index
    %51 = vector.load %arg6[%c3, %c0_36, %c0_37] : memref<4x8x16xbf16, #tpu.memory_space<vmem>>, vector<1x8x16xbf16>
    %52 = vector.shape_cast %51 : vector<1x8x16xbf16> to vector<8x16xbf16>
    %53 = vector.shape_cast %50 : vector<8x16xbf16> to vector<1x8x16xbf16>
    tpu.vector_store %arg6[%c3, %c0_36, %c0_37], %53 {strides = array<i32>} : memref<4x8x16xbf16, #tpu.memory_space<vmem>>, vector<1x8x16xbf16>,
    %54 = vector.extract_strided_slice %13 {offsets = [0, 112], sizes = [8, 16], strides = [1, 1]} : vector<8x192xbf16> to vector<8x16xbf16>
    %c3_38 = arith.constant 3 : index
    %c0_39 = arith.constant 0 : index
    %c0_40 = arith.constant 0 : index
    %55 = vector.load %arg7[%c3_38, %c0_39, %c0_40] : memref<4x8x16xbf16, #tpu.memory_space<vmem>>, vector<1x8x16xbf16>
    %56 = vector.shape_cast %55 : vector<1x8x16xbf16> to vector<8x16xbf16>
    %57 = vector.shape_cast %54 : vector<8x16xbf16> to vector<1x8x16xbf16>
    tpu.vector_store %arg7[%c3_38, %c0_39, %c0_40], %57 {strides = array<i32>} : memref<4x8x16xbf16, #tpu.memory_space<vmem>>, vector<1x8x16xbf16>,
    %58 = vector.extract_strided_slice %13 {offsets = [0, 176], sizes = [8, 16], strides = [1, 1]} : vector<8x192xbf16> to vector<8x16xbf16>
    %c3_41 = arith.constant 3 : index
    %c0_42 = arith.constant 0 : index
    %c0_43 = arith.constant 0 : index
    %59 = vector.load %arg8[%c3_41, %c0_42, %c0_43] : memref<4x8x16xbf16, #tpu.memory_space<vmem>>, vector<1x8x16xbf16>
    %60 = vector.shape_cast %59 : vector<1x8x16xbf16> to vector<8x16xbf16>
    %61 = vector.shape_cast %58 : vector<8x16xbf16> to vector<1x8x16xbf16>
    tpu.vector_store %arg8[%c3_41, %c0_42, %c0_43], %61 {strides = array<i32>} : memref<4x8x16xbf16, #tpu.memory_space<vmem>>, vector<1x8x16xbf16>,
    %c0_44 = arith.constant 0 : index
    %c0_45 = arith.constant 0 : index
    %c0_46 = arith.constant 0 : index
    %62 = vector.load %arg6[%c0_44, %c0_45, %c0_46] : memref<4x8x16xbf16, #tpu.memory_space<vmem>>, vector<4x8x16xbf16>
    %c0_47 = arith.constant 0 : index
    %c0_48 = arith.constant 0 : index
    %c0_49 = arith.constant 0 : index
    %63 = vector.load %arg7[%c0_47, %c0_48, %c0_49] : memref<4x8x16xbf16, #tpu.memory_space<vmem>>, vector<4x8x16xbf16>
    %c0_50 = arith.constant 0 : index
    %c0_51 = arith.constant 0 : index
    %c0_52 = arith.constant 0 : index
    %64 = vector.load %arg8[%c0_50, %c0_51, %c0_52] : memref<4x8x16xbf16, #tpu.memory_space<vmem>>, vector<4x8x16xbf16>
    %cst_53 = arith.constant dense<0.000000e+00> : vector<4x8x8xf32>
    %65 = tpu.matmul %62, %63, %cst_53 {dimension_numbers = #tpu.dot_dimension_numbers<[2], [2], [1], [1], [0, 0, 0, 1, 1, 1], [0], [0]>} : vector<4x8x16xbf16>, vector<4x8x16xbf16>, vector<4x8x8xf32> -> vector<4x8x8xf32>
    %66 = vector.broadcast %9 : vector<1x8x8xf32> to vector<4x8x8xf32>
    %67 = arith.addf %65, %66 : vector<4x8x8xf32>
    %cst_54 = arith.constant dense<0xFF800000> : vector<4x8xf32>
    %68 = vector.multi_reduction <maximumf>, %67, %cst_54 [2] : vector<4x8x8xf32> to vector<4x8xf32>
    %69 = vector.shape_cast %68 : vector<4x8xf32> to vector<4x8x1xf32>
    %70 = vector.broadcast %69 : vector<4x8x1xf32> to vector<4x8x8xf32>
    %71 = arith.subf %67, %70 : vector<4x8x8xf32>
    %72 = math.exp %71 : vector<4x8x8xf32>
    %cst_55 = arith.constant dense<0.000000e+00> : vector<4x8xf32>
    %73 = vector.multi_reduction <add>, %72, %cst_55 [2] : vector<4x8x8xf32> to vector<4x8xf32>
    %74 = vector.shape_cast %73 : vector<4x8xf32> to vector<4x8x1xf32>
    %75 = tpu.reciprocal %74 {approx = true} : vector<4x8x1xf32> -> vector<4x8x1xf32>
    %76 = vector.broadcast %75 : vector<4x8x1xf32> to vector<4x8x8xf32>
    %77 = arith.mulf %72, %76 : vector<4x8x8xf32>
    %78 = arith.truncf %77 : vector<4x8x8xf32> to vector<4x8x8xbf16>
    %cst_56 = arith.constant dense<0.000000e+00> : vector<4x8x16xf32>
    %79 = tpu.matmul %78, %64, %cst_56 {dimension_numbers = #tpu.dot_dimension_numbers<[2], [1], [1], [2], [0, 0, 0, 1, 1, 2], [0], [0]>} : vector<4x8x8xbf16>, vector<4x8x16xbf16>, vector<4x8x16xf32> -> vector<4x8x16xf32>
    %80 = arith.truncf %79 : vector<4x8x16xf32> to vector<4x8x16xbf16>
    %cst_57 = arith.constant dense<0.000000e+00> : vector<4x8x32xf32>
    %81 = tpu.matmul %80, %1, %cst_57 {dimension_numbers = #tpu.dot_dimension_numbers<[2], [1], [1], [2], [0, 0, 0, 1, 1, 2], [0], [0]>} : vector<4x8x16xbf16>, vector<4x16x32xbf16>, vector<4x8x32xf32> -> vector<4x8x32xf32>
    %82 = vector.extract_strided_slice %81 {offsets = [0, 0, 0], sizes = [1, 8, 32], strides = [1, 1, 1]} : vector<4x8x32xf32> to vector<1x8x32xf32>
    %83 = vector.shape_cast %82 : vector<1x8x32xf32> to vector<8x32xf32>
    %84 = vector.broadcast %2 : vector<1x32xf32> to vector<8x32xf32>
    %85 = arith.addf %84, %83 : vector<8x32xf32>
    %86 = vector.extract_strided_slice %81 {offsets = [1, 0, 0], sizes = [1, 8, 32], strides = [1, 1, 1]} : vector<4x8x32xf32> to vector<1x8x32xf32>
    %87 = vector.shape_cast %86 : vector<1x8x32xf32> to vector<8x32xf32>
    %88 = arith.addf %85, %87 : vector<8x32xf32>
    %89 = vector.extract_strided_slice %81 {offsets = [2, 0, 0], sizes = [1, 8, 32], strides = [1, 1, 1]} : vector<4x8x32xf32> to vector<1x8x32xf32>
    %90 = vector.shape_cast %89 : vector<1x8x32xf32> to vector<8x32xf32>
    %91 = arith.addf %88, %90 : vector<8x32xf32>
    %92 = vector.extract_strided_slice %81 {offsets = [3, 0, 0], sizes = [1, 8, 32], strides = [1, 1, 1]} : vector<4x8x32xf32> to vector<1x8x32xf32>
    %93 = vector.shape_cast %92 : vector<1x8x32xf32> to vector<8x32xf32>
    %94 = arith.addf %91, %93 : vector<8x32xf32>
    %95 = arith.truncf %94 : vector<8x32xf32> to vector<8x32xbf16>
    %c0_58 = arith.constant 0 : index
    %c0_59 = arith.constant 0 : index
    %c0_60 = arith.constant 0 : index
    %96 = vector.load %arg5[%c0_58, %c0_59, %c0_60] : memref<2x8x32xbf16, #tpu.memory_space<vmem>>, vector<1x8x32xbf16>
    %97 = vector.shape_cast %96 : vector<1x8x32xbf16> to vector<8x32xbf16>
    %98 = vector.shape_cast %95 : vector<8x32xbf16> to vector<1x8x32xbf16>
    tpu.vector_store %arg5[%c0_58, %c0_59, %c0_60], %98 {strides = array<i32>} : memref<2x8x32xbf16, #tpu.memory_space<vmem>>, vector<1x8x32xbf16>,
    %c1_61 = arith.constant 1 : index
    %c0_62 = arith.constant 0 : index
    %c0_63 = arith.constant 0 : index
    %99 = vector.load %arg1[%c1_61, %c0_62, %c0_63] : memref<2x8x32xbf16, #tpu.memory_space<vmem>>, vector<1x8x32xbf16>
    %100 = vector.shape_cast %99 : vector<1x8x32xbf16> to vector<8x32xbf16>
    %cst_64 = arith.constant dense<0.000000e+00> : vector<8x192xf32>
    %101 = tpu.matmul %100, %0, %cst_64 {dimension_numbers = #tpu.dot_dimension_numbers<[1], [0], [0], [1], [0, 0, 1, 1], [], []>} : vector<8x32xbf16>, vector<32x192xbf16>, vector<8x192xf32> -> vector<8x192xf32>
    %102 = arith.truncf %101 : vector<8x192xf32> to vector<8x192xbf16>
    %103 = vector.extract_strided_slice %102 {offsets = [0, 0], sizes = [8, 16], strides = [1, 1]} : vector<8x192xbf16> to vector<8x16xbf16>
    %c0_65 = arith.constant 0 : index
    %c0_66 = arith.constant 0 : index
    %c0_67 = arith.constant 0 : index
    %104 = vector.load %arg6[%c0_65, %c0_66, %c0_67] : memref<4x8x16xbf16, #tpu.memory_space<vmem>>, vector<1x8x16xbf16>
    %105 = vector.shape_cast %104 : vector<1x8x16xbf16> to vector<8x16xbf16>
    %106 = vector.shape_cast %103 : vector<8x16xbf16> to vector<1x8x16xbf16>
    tpu.vector_store %arg6[%c0_65, %c0_66, %c0_67], %106 {strides = array<i32>} : memref<4x8x16xbf16, #tpu.memory_space<vmem>>, vector<1x8x16xbf16>,
    %107 = vector.extract_strided_slice %102 {offsets = [0, 64], sizes = [8, 16], strides = [1, 1]} : vector<8x192xbf16> to vector<8x16xbf16>
    %c0_68 = arith.constant 0 : index
    %c0_69 = arith.constant 0 : index
    %c0_70 = arith.constant 0 : index
    %108 = vector.load %arg7[%c0_68, %c0_69, %c0_70] : memref<4x8x16xbf16, #tpu.memory_space<vmem>>, vector<1x8x16xbf16>
    %109 = vector.shape_cast %108 : vector<1x8x16xbf16> to vector<8x16xbf16>
    %110 = vector.shape_cast %107 : vector<8x16xbf16> to vector<1x8x16xbf16>
    tpu.vector_store %arg7[%c0_68, %c0_69, %c0_70], %110 {strides = array<i32>} : memref<4x8x16xbf16, #tpu.memory_space<vmem>>, vector<1x8x16xbf16>,
    %111 = vector.extract_strided_slice %102 {offsets = [0, 128], sizes = [8, 16], strides = [1, 1]} : vector<8x192xbf16> to vector<8x16xbf16>
    %c0_71 = arith.constant 0 : index
    %c0_72 = arith.constant 0 : index
    %c0_73 = arith.constant 0 : index
    %112 = vector.load %arg8[%c0_71, %c0_72, %c0_73] : memref<4x8x16xbf16, #tpu.memory_space<vmem>>, vector<1x8x16xbf16>
    %113 = vector.shape_cast %112 : vector<1x8x16xbf16> to vector<8x16xbf16>
    %114 = vector.shape_cast %111 : vector<8x16xbf16> to vector<1x8x16xbf16>
    tpu.vector_store %arg8[%c0_71, %c0_72, %c0_73], %114 {strides = array<i32>} : memref<4x8x16xbf16, #tpu.memory_space<vmem>>, vector<1x8x16xbf16>,
    %115 = vector.extract_strided_slice %102 {offsets = [0, 16], sizes = [8, 16], strides = [1, 1]} : vector<8x192xbf16> to vector<8x16xbf16>
    %c1_74 = arith.constant 1 : index
    %c0_75 = arith.constant 0 : index
    %c0_76 = arith.constant 0 : index
    %116 = vector.load %arg6[%c1_74, %c0_75, %c0_76] : memref<4x8x16xbf16, #tpu.memory_space<vmem>>, vector<1x8x16xbf16>
    %117 = vector.shape_cast %116 : vector<1x8x16xbf16> to vector<8x16xbf16>
    %118 = vector.shape_cast %115 : vector<8x16xbf16> to vector<1x8x16xbf16>
    tpu.vector_store %arg6[%c1_74, %c0_75, %c0_76], %118 {strides = array<i32>} : memref<4x8x16xbf16, #tpu.memory_space<vmem>>, vector<1x8x16xbf16>,
    %119 = vector.extract_strided_slice %102 {offsets = [0, 80], sizes = [8, 16], strides = [1, 1]} : vector<8x192xbf16> to vector<8x16xbf16>
    %c1_77 = arith.constant 1 : index
    %c0_78 = arith.constant 0 : index
    %c0_79 = arith.constant 0 : index
    %120 = vector.load %arg7[%c1_77, %c0_78, %c0_79] : memref<4x8x16xbf16, #tpu.memory_space<vmem>>, vector<1x8x16xbf16>
    %121 = vector.shape_cast %120 : vector<1x8x16xbf16> to vector<8x16xbf16>
    %122 = vector.shape_cast %119 : vector<8x16xbf16> to vector<1x8x16xbf16>
    tpu.vector_store %arg7[%c1_77, %c0_78, %c0_79], %122 {strides = array<i32>} : memref<4x8x16xbf16, #tpu.memory_space<vmem>>, vector<1x8x16xbf16>,
    %123 = vector.extract_strided_slice %102 {offsets = [0, 144], sizes = [8, 16], strides = [1, 1]} : vector<8x192xbf16> to vector<8x16xbf16>
    %c1_80 = arith.constant 1 : index
    %c0_81 = arith.constant 0 : index
    %c0_82 = arith.constant 0 : index
    %124 = vector.load %arg8[%c1_80, %c0_81, %c0_82] : memref<4x8x16xbf16, #tpu.memory_space<vmem>>, vector<1x8x16xbf16>
    %125 = vector.shape_cast %124 : vector<1x8x16xbf16> to vector<8x16xbf16>
    %126 = vector.shape_cast %123 : vector<8x16xbf16> to vector<1x8x16xbf16>
    tpu.vector_store %arg8[%c1_80, %c0_81, %c0_82], %126 {strides = array<i32>} : memref<4x8x16xbf16, #tpu.memory_space<vmem>>, vector<1x8x16xbf16>,
    %127 = vector.extract_strided_slice %102 {offsets = [0, 32], sizes = [8, 16], strides = [1, 1]} : vector<8x192xbf16> to vector<8x16xbf16>
    %c2_83 = arith.constant 2 : index
    %c0_84 = arith.constant 0 : index
    %c0_85 = arith.constant 0 : index
    %128 = vector.load %arg6[%c2_83, %c0_84, %c0_85] : memref<4x8x16xbf16, #tpu.memory_space<vmem>>, vector<1x8x16xbf16>
    %129 = vector.shape_cast %128 : vector<1x8x16xbf16> to vector<8x16xbf16>
    %130 = vector.shape_cast %127 : vector<8x16xbf16> to vector<1x8x16xbf16>
    tpu.vector_store %arg6[%c2_83, %c0_84, %c0_85], %130 {strides = array<i32>} : memref<4x8x16xbf16, #tpu.memory_space<vmem>>, vector<1x8x16xbf16>,
    %131 = vector.extract_strided_slice %102 {offsets = [0, 96], sizes = [8, 16], strides = [1, 1]} : vector<8x192xbf16> to vector<8x16xbf16>
    %c2_86 = arith.constant 2 : index
    %c0_87 = arith.constant 0 : index
    %c0_88 = arith.constant 0 : index
    %132 = vector.load %arg7[%c2_86, %c0_87, %c0_88] : memref<4x8x16xbf16, #tpu.memory_space<vmem>>, vector<1x8x16xbf16>
    %133 = vector.shape_cast %132 : vector<1x8x16xbf16> to vector<8x16xbf16>
    %134 = vector.shape_cast %131 : vector<8x16xbf16> to vector<1x8x16xbf16>
    tpu.vector_store %arg7[%c2_86, %c0_87, %c0_88], %134 {strides = array<i32>} : memref<4x8x16xbf16, #tpu.memory_space<vmem>>, vector<1x8x16xbf16>,
    %135 = vector.extract_strided_slice %102 {offsets = [0, 160], sizes = [8, 16], strides = [1, 1]} : vector<8x192xbf16> to vector<8x16xbf16>
    %c2_89 = arith.constant 2 : index
    %c0_90 = arith.constant 0 : index
    %c0_91 = arith.constant 0 : index
    %136 = vector.load %arg8[%c2_89, %c0_90, %c0_91] : memref<4x8x16xbf16, #tpu.memory_space<vmem>>, vector<1x8x16xbf16>
    %137 = vector.shape_cast %136 : vector<1x8x16xbf16> to vector<8x16xbf16>
    %138 = vector.shape_cast %135 : vector<8x16xbf16> to vector<1x8x16xbf16>
    tpu.vector_store %arg8[%c2_89, %c0_90, %c0_91], %138 {strides = array<i32>} : memref<4x8x16xbf16, #tpu.memory_space<vmem>>, vector<1x8x16xbf16>,
    %139 = vector.extract_strided_slice %102 {offsets = [0, 48], sizes = [8, 16], strides = [1, 1]} : vector<8x192xbf16> to vector<8x16xbf16>
    %c3_92 = arith.constant 3 : index
    %c0_93 = arith.constant 0 : index
    %c0_94 = arith.constant 0 : index
    %140 = vector.load %arg6[%c3_92, %c0_93, %c0_94] : memref<4x8x16xbf16, #tpu.memory_space<vmem>>, vector<1x8x16xbf16>
    %141 = vector.shape_cast %140 : vector<1x8x16xbf16> to vector<8x16xbf16>
    %142 = vector.shape_cast %139 : vector<8x16xbf16> to vector<1x8x16xbf16>
    tpu.vector_store %arg6[%c3_92, %c0_93, %c0_94], %142 {strides = array<i32>} : memref<4x8x16xbf16, #tpu.memory_space<vmem>>, vector<1x8x16xbf16>,
    %143 = vector.extract_strided_slice %102 {offsets = [0, 112], sizes = [8, 16], strides = [1, 1]} : vector<8x192xbf16> to vector<8x16xbf16>
    %c3_95 = arith.constant 3 : index
    %c0_96 = arith.constant 0 : index
    %c0_97 = arith.constant 0 : index
    %144 = vector.load %arg7[%c3_95, %c0_96, %c0_97] : memref<4x8x16xbf16, #tpu.memory_space<vmem>>, vector<1x8x16xbf16>
    %145 = vector.shape_cast %144 : vector<1x8x16xbf16> to vector<8x16xbf16>
    %146 = vector.shape_cast %143 : vector<8x16xbf16> to vector<1x8x16xbf16>
    tpu.vector_store %arg7[%c3_95, %c0_96, %c0_97], %146 {strides = array<i32>} : memref<4x8x16xbf16, #tpu.memory_space<vmem>>, vector<1x8x16xbf16>,
    %147 = vector.extract_strided_slice %102 {offsets = [0, 176], sizes = [8, 16], strides = [1, 1]} : vector<8x192xbf16> to vector<8x16xbf16>
    %c3_98 = arith.constant 3 : index
    %c0_99 = arith.constant 0 : index
    %c0_100 = arith.constant 0 : index
    %148 = vector.load %arg8[%c3_98, %c0_99, %c0_100] : memref<4x8x16xbf16, #tpu.memory_space<vmem>>, vector<1x8x16xbf16>
    %149 = vector.shape_cast %148 : vector<1x8x16xbf16> to vector<8x16xbf16>
    %150 = vector.shape_cast %147 : vector<8x16xbf16> to vector<1x8x16xbf16>
    tpu.vector_store %arg8[%c3_98, %c0_99, %c0_100], %150 {strides = array<i32>} : memref<4x8x16xbf16, #tpu.memory_space<vmem>>, vector<1x8x16xbf16>,
    %c0_101 = arith.constant 0 : index
    %c0_102 = arith.constant 0 : index
    %c0_103 = arith.constant 0 : index
    %151 = vector.load %arg6[%c0_101, %c0_102, %c0_103] : memref<4x8x16xbf16, #tpu.memory_space<vmem>>, vector<4x8x16xbf16>
    %c0_104 = arith.constant 0 : index
    %c0_105 = arith.constant 0 : index
    %c0_106 = arith.constant 0 : index
    %152 = vector.load %arg7[%c0_104, %c0_105, %c0_106] : memref<4x8x16xbf16, #tpu.memory_space<vmem>>, vector<4x8x16xbf16>
    %c0_107 = arith.constant 0 : index
    %c0_108 = arith.constant 0 : index
    %c0_109 = arith.constant 0 : index
    %153 = vector.load %arg8[%c0_107, %c0_108, %c0_109] : memref<4x8x16xbf16, #tpu.memory_space<vmem>>, vector<4x8x16xbf16>
    %cst_110 = arith.constant dense<0.000000e+00> : vector<4x8x8xf32>
    %154 = tpu.matmul %151, %152, %cst_110 {dimension_numbers = #tpu.dot_dimension_numbers<[2], [2], [1], [1], [0, 0, 0, 1, 1, 1], [0], [0]>} : vector<4x8x16xbf16>, vector<4x8x16xbf16>, vector<4x8x8xf32> -> vector<4x8x8xf32>
    %155 = vector.broadcast %9 : vector<1x8x8xf32> to vector<4x8x8xf32>
    %156 = arith.addf %154, %155 : vector<4x8x8xf32>
    %cst_111 = arith.constant dense<0xFF800000> : vector<4x8xf32>
    %157 = vector.multi_reduction <maximumf>, %156, %cst_111 [2] : vector<4x8x8xf32> to vector<4x8xf32>
    %158 = vector.shape_cast %157 : vector<4x8xf32> to vector<4x8x1xf32>
    %159 = vector.broadcast %158 : vector<4x8x1xf32> to vector<4x8x8xf32>
    %160 = arith.subf %156, %159 : vector<4x8x8xf32>
    %161 = math.exp %160 : vector<4x8x8xf32>
    %cst_112 = arith.constant dense<0.000000e+00> : vector<4x8xf32>
    %162 = vector.multi_reduction <add>, %161, %cst_112 [2] : vector<4x8x8xf32> to vector<4x8xf32>
    %163 = vector.shape_cast %162 : vector<4x8xf32> to vector<4x8x1xf32>
    %164 = tpu.reciprocal %163 {approx = true} : vector<4x8x1xf32> -> vector<4x8x1xf32>
    %165 = vector.broadcast %164 : vector<4x8x1xf32> to vector<4x8x8xf32>
    %166 = arith.mulf %161, %165 : vector<4x8x8xf32>
    %167 = arith.truncf %166 : vector<4x8x8xf32> to vector<4x8x8xbf16>
    %cst_113 = arith.constant dense<0.000000e+00> : vector<4x8x16xf32>
    %168 = tpu.matmul %167, %153, %cst_113 {dimension_numbers = #tpu.dot_dimension_numbers<[2], [1], [1], [2], [0, 0, 0, 1, 1, 2], [0], [0]>} : vector<4x8x8xbf16>, vector<4x8x16xbf16>, vector<4x8x16xf32> -> vector<4x8x16xf32>
    %169 = arith.truncf %168 : vector<4x8x16xf32> to vector<4x8x16xbf16>
    %cst_114 = arith.constant dense<0.000000e+00> : vector<4x8x32xf32>
    %170 = tpu.matmul %169, %1, %cst_114 {dimension_numbers = #tpu.dot_dimension_numbers<[2], [1], [1], [2], [0, 0, 0, 1, 1, 2], [0], [0]>} : vector<4x8x16xbf16>, vector<4x16x32xbf16>, vector<4x8x32xf32> -> vector<4x8x32xf32>
    %171 = vector.extract_strided_slice %170 {offsets = [0, 0, 0], sizes = [1, 8, 32], strides = [1, 1, 1]} : vector<4x8x32xf32> to vector<1x8x32xf32>
    %172 = vector.shape_cast %171 : vector<1x8x32xf32> to vector<8x32xf32>
    %173 = vector.broadcast %2 : vector<1x32xf32> to vector<8x32xf32>
    %174 = arith.addf %173, %172 : vector<8x32xf32>
    %175 = vector.extract_strided_slice %170 {offsets = [1, 0, 0], sizes = [1, 8, 32], strides = [1, 1, 1]} : vector<4x8x32xf32> to vector<1x8x32xf32>
    %176 = vector.shape_cast %175 : vector<1x8x32xf32> to vector<8x32xf32>
    %177 = arith.addf %174, %176 : vector<8x32xf32>
    %178 = vector.extract_strided_slice %170 {offsets = [2, 0, 0], sizes = [1, 8, 32], strides = [1, 1, 1]} : vector<4x8x32xf32> to vector<1x8x32xf32>
    %179 = vector.shape_cast %178 : vector<1x8x32xf32> to vector<8x32xf32>
    %180 = arith.addf %177, %179 : vector<8x32xf32>
    %181 = vector.extract_strided_slice %170 {offsets = [3, 0, 0], sizes = [1, 8, 32], strides = [1, 1, 1]} : vector<4x8x32xf32> to vector<1x8x32xf32>
    %182 = vector.shape_cast %181 : vector<1x8x32xf32> to vector<8x32xf32>
    %183 = arith.addf %180, %182 : vector<8x32xf32>
    %184 = arith.truncf %183 : vector<8x32xf32> to vector<8x32xbf16>
    %c1_115 = arith.constant 1 : index
    %c0_116 = arith.constant 0 : index
    %c0_117 = arith.constant 0 : index
    %185 = vector.load %arg5[%c1_115, %c0_116, %c0_117] : memref<2x8x32xbf16, #tpu.memory_space<vmem>>, vector<1x8x32xbf16>
    %186 = vector.shape_cast %185 : vector<1x8x32xbf16> to vector<8x32xbf16>
    %187 = vector.shape_cast %184 : vector<8x32xbf16> to vector<1x8x32xbf16>
    tpu.vector_store %arg5[%c1_115, %c0_116, %c0_117], %187 {strides = array<i32>} : memref<2x8x32xbf16, #tpu.memory_space<vmem>>, vector<1x8x32xbf16>,
    return
  }
  func.func @transform_0(%arg0: i32) -> (i32, i32, i32) {
    %c0_i32 = arith.constant 0 : i32
    %c0_i32_0 = arith.constant 0 : i32
    %c0_i32_1 = arith.constant 0 : i32
    return %arg0, %c0_i32, %c0_i32_0 : i32, i32, i32
  }
  func.func @transform_1(%arg0: i32) -> (i32, i32) {
    %c0_i32 = arith.constant 0 : i32
    %c0_i32_0 = arith.constant 0 : i32
    %c0_i32_1 = arith.constant 0 : i32
    return %c0_i32, %c0_i32_0 : i32, i32
  }
  func.func @transform_2(%arg0: i32) -> (i32, i32, i32) {
    %c0_i32 = arith.constant 0 : i32
    %c0_i32_0 = arith.constant 0 : i32
    %c0_i32_1 = arith.constant 0 : i32
    %c0_i32_2 = arith.constant 0 : i32
    return %c0_i32, %c0_i32_0, %c0_i32_1 : i32, i32, i32
  }
  func.func @transform_3(%arg0: i32) -> (i32, i32) {
    %c0_i32 = arith.constant 0 : i32
    %c0_i32_0 = arith.constant 0 : i32
    %c0_i32_1 = arith.constant 0 : i32
    return %c0_i32, %c0_i32_0 : i32, i32
  }
  func.func @transform_4(%arg0: i32) -> (i32, i32, i32) {
    %c0_i32 = arith.constant 0 : i32
    %c0_i32_0 = arith.constant 0 : i32
    %c0_i32_1 = arith.constant 0 : i32
    return %arg0, %c0_i32, %c0_i32_0 : i32, i32, i32
  }
}

</mosaic_0001>

<bundles_post_ra>
// kernel: tpu_custom_call.1
= control target key start
LH: loop header
LB: loop body
LE: loop exit
PB: predicated region body
PF: predicated region fallthrough
CT: control target
= control target key end

     0   :  { %9 = vsyncpa [#allocation6], 0  ;;  %s2958_s0 = inlined_call_operand.hbm [shape: bf16[4,8,32], index: 0, kind: input, shape index: {}]   ;;  %s2959_s1 = inlined_call_operand.hbm [shape: bf16[32,192], index: 1, kind: input, shape index: {}]   ;;  %s2960_s2 = inlined_call_operand.hbm [shape: bf16[4,16,32], index: 2, kind: input, shape index: {}]   ;;  %s2961_s3 = inlined_call_operand.vmem [shape: f32[1,32], index: 3, kind: input, shape index: {}]   ;;  %s2962_s4 = inlined_call_operand.hbm [shape: bf16[4,8,32], index: 4, kind: output, shape index: {}]  }
   0x1   :  { %11 = vsyncpa [#allocation6 + $0x1], 0 }
   0x2   :  { %12 = vsyncpa [#allocation9], 0 }
   0x3   :  { %13 = vsyncpa [#allocation7], 0 }
   0x4   :  { %15 = vsyncpa [#allocation7 + $0x1], 0  ;;  %s2459_s15 = smov 0   ;;  %s2461_s16 = smov 0  }
   0x5   :  { %s2463_s17 = smov 0   ;;  %s2465_s18 = smov 0  }
   0x6 LB: > { %s2480_s19 = sadd.s32 4294967295, %s2413_s18   ;;  %s1850_s20 = sadd.s32 4294967294, %s2413_s18   ;;  %s2413_s18 = sphi %s2465_s18, %s2982_s18   ;;  %s2409_s17 = sphi %s2463_s17, %s2981_s17   ;;  %s2405_s16 = sphi %s2461_s16, %s2980_s16   ;;  %s2401_s15 = sphi %s2459_s15, %s2979_s15  }
   0x7   : > { %p41_p0 = scmp.ne.s32.totalorder %s2405_s16, %s2401_s15  ;;  %p2963_p1 = scmp.eq.s32.totalorder %s2480_s19, 0 }
   0x8   : > { %p134_p3 = scmp.eq.s32.totalorder %s1850_s20, 1  ;;  %p1851_p5 = scmp.ge.s32.totalorder %s2413_s18, 1 }
   0x9   : > { %p2489_p4 = por %p2963_p1, %p41_p0  ;;  %p141_p7 = scmp.lt.s32.totalorder %s2413_s18, 3 }
   0xa   : > { %p2494_p6 = por %p134_p3, %p41_p0  ;;  %s2415_s24 = smov [#allocation8]  }
   0xb   : > { %s2966_s21 = scalar_select %p2489_p4, 1, 0 }
   0xc   : > { %s2967_s22 = scalar_select %p2494_p6, 1, 0 }
   0xd   : > { %p2499_p8 = pnand %p1851_p5, %p141_p7  ;;  %s153_s25 = sshll.u32 %s2415_s24, 4  ;;  %s2503_s25 = int_to_ptr.vmem [resolvable:$true] %s153_s25 }
   0xe   : > { %s2416_s27 = smov [#allocation10]   ;;  %s2257_s5 = scalar_lea.hbm %s2959_s1, 512 }
   0xf   : > { %p2145_p9 = pneg %p2499_p8  ;;  %s166_s28 = sshll.u32 %s2416_s27, 4  ;;  %s2514_s28 = int_to_ptr.vmem [resolvable:$true] %s166_s28 }
  0x10   : > { %p2258_p12 = scmp.ne.s32.totalorder %s2959_s1, %s2257_s5  ;;  %p2264_p5 = scmp.lt.u32.totalorder %s2257_s5, %s2959_s1 }
  0x11   : > { %p2510_p11 = pnand %p2145_p9, %p2963_p1 }
  0x13   : > { %p2259_p13 = pneg %p2510_p11 }
  0x15   : > { %p2260_p0 = pnand %p2259_p13, %p2258_p12 }
  0x17   : > { %p2261_p3 = pneg %p2260_p0 }
  0x19   : > { %p2266_p7 = pnand %p2264_p5, %p2261_p3 }
  0x1b   : > { %2269 = shalt.err (!%p2266_p7)
}
  0x1c   : > { %s2270_s10 = scalar_lea.vmem %s2503_s25, 512  ;;  %p2278_p2 = scmp.lt.s32.totalorder %s2503_s25, %s2503_s25 }
  0x1d   : > { %p2271_p9 = scmp.ne.s32.totalorder %s2503_s25, %s2270_s10  ;;  %p2279_p12 = scmp.lt.s32.totalorder %s2270_s10, %s2270_s10 }
  0x1f   : > { %p2273_p10 = pnand %p2271_p9, %p2259_p13  ;;  %p2280_p0 = por %p2279_p12, %p2278_p2 }
  0x21   : > { %p2274_p1 = pneg %p2273_p10 }
  0x23   : > { %p2281_p6 = pnand %p2280_p0, %p2274_p1 }
  0x25   : > { %2284 = shalt.err (!%p2281_p6)
}
  0x26   : > { %s2417_s11 = smov 128   ;;  %s2418_s12 = smov 8  }
  0x27   : > { %2148 = dma.hbm_to_vmem [thread:$0]  (!%p2510_p11), %s2959_s1, 512, %s2503_s25, [#allocation9], %s2417_s11, %s2417_s11, %s2418_s12  }
  0x28   : > { %s2285_s27 = scalar_lea.hbm %s2960_s2, 512 }
  0x29   : > { %p2286_p2 = scmp.ne.s32.totalorder %s2960_s2, %s2285_s27  ;;  %p2292_p10 = scmp.lt.u32.totalorder %s2285_s27, %s2960_s2 }
  0x2b   : > { %p2288_p1 = pnand %p2286_p2, %p2259_p13 }
  0x2d   : > { %p2289_p6 = pneg %p2288_p1 }
  0x2f   : > { %p2294_p3 = pnand %p2292_p10, %p2289_p6 }
  0x31   : > { %2297 = shalt.err (!%p2294_p3)
}
  0x32   : > { %s2298_s25 = scalar_lea.vmem %s2514_s28, 512  ;;  %p2306_p12 = scmp.lt.s32.totalorder %s2514_s28, %s2514_s28 }
  0x33   : > { %p2299_p5 = scmp.ne.s32.totalorder %s2514_s28, %s2298_s25  ;;  %p2307_p0 = scmp.lt.s32.totalorder %s2298_s25, %s2298_s25 }
  0x35   : > { %p2301_p7 = pnand %p2299_p5, %p2259_p13  ;;  %p2308_p2 = por %p2307_p0, %p2306_p12 }
  0x37   : > { %p2302_p9 = pneg %p2301_p7 }
  0x39   : > { %p2309_p1 = pnand %p2308_p2, %p2302_p9 }
  0x3b   : > { %2312 = shalt.err (!%p2309_p1)
}
  0x3c   : > { %s2419_s7 = smov 64   ;;  %s2420_s8 = smov 4  }
  0x3d   : > { %2151 = dma.hbm_to_vmem [thread:$0]  (!%p2510_p11), %s2960_s2, 512, %s2514_s28, [#allocation9], %s2419_s7, %s2419_s7, %s2420_s8  }
  0x3e   : > { %s2572_s11 = sadd.s32 1, %s2413_s18   ;;  %s28_s13 = sadd.s32 1, %s2409_s17 }
  0x3f   : > { %s25_s12 = ssub.s32 %s2413_s18, %s2572_s11  ;;  %p35_p6 = scmp.ne.s32.totalorder %s2409_s17, %s2405_s16 }
  0x40   : > { %p26_p13 = scmp.eq.s32.totalorder %s25_s12, 0  ;;  %p36_p10 = scmp.eq.s32.totalorder %s2413_s18, 0 }
  0x41   : > { %p2970_p5 = scmp.eq.s32.totalorder %s2480_s19, 1  ;;  %p2162_p9 = scmp.lt.s32.totalorder %s2413_s18, 2 }
  0x42   : > { %s2581_s14 = scalar_select %p26_p13, %s2409_s17, %s28_s13  }
  0x43   : > { %p37_p3 = por %p36_p10, %p35_p6  ;;  %p2585_p7 = por %p2970_p5, %p35_p6 }
  0x44   : > { %s183_s20 = sand.u32 1, %s2409_s17   ;;  %s1909_s28 = sshll.u32 %s2413_s18, 7 }
  0x45   : > { %s2971_s26 = scalar_select %p2585_p7, 1, 0 }
  0x46   : > { %s1855_s24 = sshll.u32 %s183_s20, 3  ;;  %s2595_s30 = scalar_lea.hbm %s2958_s0, %s1909_s28 }
  0x47   : > { %s187_s5 = scalar_lea.vmem [#allocation5], %s1855_s24  ;;  %p2599_p11 = pnand %p2162_p9, %p37_p3 }
  0x48   : > { %s194_s6 = sshll.u32 %s187_s5, 4  ;;  %s2603_s9 = scalar_lea.sflag [#allocation6], %s183_s20  ;;  %s2597_s6 = int_to_ptr.vmem [resolvable:$true] %s194_s6 }
  0x49   : > { %s2313_s10 = scalar_lea.hbm %s2595_s30, 128  ;;  %p2315_p0 = pneg %p2599_p11 }
  0x4a   : > { %p2314_p12 = scmp.ne.s32.totalorder %s2595_s30, %s2313_s10  ;;  %s2318_s24 = scalar_lea.hbm %s2958_s0, 256 }
  0x4b   : > { %p2319_p13 = scmp.lt.u32.totalorder %s2595_s30, %s2958_s0  ;;  %p2320_p6 = scmp.lt.u32.totalorder %s2318_s24, %s2313_s10 }
  0x4c   : > { %p2316_p2 = pnand %p2315_p0, %p2314_p12  ;;  %p2322_p3 = scmp.lt.u32.totalorder %s2313_s10, %s2595_s30 }
  0x4d   : > { %p2321_p10 = por %p2320_p6, %p2319_p13 }
  0x4e   : > { %p2317_p1 = pneg %p2316_p2 }
  0x4f   : > { %p2323_p5 = por %p2322_p3, %p2321_p10 }
  0x51   : > { %p2324_p9 = pnand %p2323_p5, %p2317_p1 }
  0x53   : > { %2327 = shalt.err (!%p2324_p9)
}
  0x54   : > { %s2328_s20 = scalar_lea.vmem %s2597_s6, 128  ;;  %s2421_s29 = smov [#allocation5]  }
  0x55   : > { %p2329_p12 = scmp.ne.s32.totalorder %s2597_s6, %s2328_s20  ;;  %s2333_s5 = sshll.u32 %s2421_s29, 4  ;;  %s2334_s5 = int_to_ptr.vmem [resolvable:$false] %s2333_s5 }
  0x56   : > { %s2335_s12 = scalar_lea.vmem %s2334_s5, 256  ;;  %p2336_p4 = scmp.lt.s32.totalorder %s2597_s6, %s2334_s5 }
  0x57   : > { %p2331_p2 = pnand %p2329_p12, %p2315_p0  ;;  %p2337_p13 = scmp.lt.s32.totalorder %s2335_s12, %s2328_s20 }
  0x59   : > { %p2332_p7 = pneg %p2331_p2  ;;  %p2338_p6 = por %p2337_p13, %p2336_p4 }
  0x5b   : > { %p2339_p10 = pnand %p2338_p6, %p2332_p7 }
  0x5d   : > { %2342 = shalt.err (!%p2339_p10)
}
  0x5e   : > { %2155 = dma.hbm_to_vmem [thread:$0]  (!%p2599_p11), %s2595_s30, 128, %s2597_s6, %s2603_s9, %s2419_s7, %s2419_s7, %s2420_s8  }
  0x5f   : > { %206 = sbr.rel (%p2499_p8) target bundleno = 2382 (0x94e), region = 36  ;;  %s2637_s10 = sand.u32 (!%p2499_p8), 1, %s2405_s16  }
  0x60   : > { %s1859_s13 = sshll.u32 (!%p2499_p8), %s2637_s10, 3  ;;  %s209_s24 = scalar_lea.sflag (!%p2499_p8), [#allocation6], %s2637_s10 }
  0x61   : > { %s2643_s25 = scalar_lea.vmem (!%p2499_p8), [#allocation5], %s1859_s13  ;;  %p2973_p4 = scmp.ne.s32.totalorder (!%p2499_p8), %s2966_s21, 0 }
  0x66   : > { %2388 = dma.done.wait (%p2973_p4), %s209_s24, 128  }
  0x67   : > { %2390 = vsyncadd (%p2973_p4), %s209_s24, 4294967168  ;;  %p2974_p7 = scmp.eq.s32.totalorder %s2480_s19, 0 }
  0x69   : > { %2392 = dma.done.wait (%p2974_p7), [#allocation9], 1024   ;;  %p2975_p8 = pmov %p2974_p7 }
  0x6a   : > { %v2422_v0 = vmov 0   ;;  %v2654_v1 = vld [vmem:[#allocation8 + $0x4] ss:$8 sps:$4 sm:$0xff]   ;;  %v2656_v2 = vld [vmem:[#allocation8] ss:$8 sps:$4 sm:$0xff]   ;;  %vm288_vm0 = vcmask 261120   ;;  %v261_v34 = vlaneseq }
  0x6b   : > { %2394 = vsyncadd (%p2975_p8), [#allocation9], 4294966272  ;;  %324 = vmatprep.mubr.bf16.mxu1 %v2422_v0  ;;  %292 = vmatprep.subr.bf16.mxu1 %v2654_v1  ;;  %v2659_v3 = vld [vmem:[#allocation8 + $0x14] ss:$8 sps:$4 sm:$0xff]   ;;  %v2661_v4 = vld [vmem:[#allocation8 + $0x10] ss:$8 sps:$4 sm:$0xff]  }
  0x6c   : > { %293 = vmatpush1.bf16.msra.mxu1 %v2656_v2  ;;  %v267_v5 = vld [vmem:[%s2643_s25] sm:$0xf]  ;;  %v2423_v6 = vmov 0.0   ;;  %vm335_vm1 = vcmask 125952   ;;  %s2424_s21 = smov 112   ;;  %s2425_s23 = smov 64  }
  0x6d   : > { %294 = vmatprep.subr.bf16.mxu1 %v2659_v3  ;;  %1981 = vmatprep.subr.bf16.mxu0 %v2423_v6  ;;  %vm2426_vm2 = vmmov 0   ;;  %s2427_s7 = smov 16   ;;  %s2428_s8 = smov 48   ;;  %vm405_vm3 = vcmask 130048   ;;  %vm642_vm4 = vcmask 1043456   ;;  %v262_v35 = vshrl.u32 %v261_v34, 7 }
  0x6e   : > { %1983 = vmatprep.mubr.msk.bf16.mxu0 %vm2426_vm2, %v2423_v6  ;;  %s2429_s30 = smov 32   ;;  %s2430_s6 = smov 80   ;;  %v264_v36 = vand.u32 127, %v261_v34  ;;  %vm590_vm6 = vcmask 64512   ;;  %vm1035_vm7 = vcmask 257024  }
  0x6f   : > { %s2431_s9 = smov 96   ;;  %s2851_s20 = scalar_lea.vmem [#allocation11], %s1859_s13 }
  0x70   : > { %295 = vmatpush1.bf16.msra.mxu1 %v2661_v4  ;;  %vm265_vm5 = vcmp.eq.s32.totalorder %v262_v35, %v264_v36  ;;  %s1914_s29 = sshll.u32 %s2480_s19, 7  ;;  %s1758_s5 = sshll.u32 %s2851_s20, 4  ;;  %s2910_s5 = int_to_ptr.vmem [resolvable:$true] %s1758_s5 }
  0x71   : > { %1963 = vmatprep.subr.bf16.mxu1 %v2423_v6  ;;  %v2716_v41 = vsel %vm265_vm5, -3.4028235e+38, %v2423_v6  ;;  %s2908_s24 = scalar_lea.hbm %s2962_s4, %s1914_s29  ;;  %s1745_s19 = scalar_lea.sflag [#allocation7], %s2637_s10 }
  0x72   : > { %p2976_p0 = scmp.ne.s32.totalorder %s2971_s26, 0 }
  0x73   : > { %1867 = vmatmul.mubr.msk.bf16.vlgmr.msra.gmra.mrb[0].mxu1 %vm288_vm0, %v267_v5 }
  0x74   : > { %1965 = vmatprep.mubr.msk.bf16.mxu1 %vm2426_vm2, %v2423_v6 }
 0x146   : > { %v326_v7 = vpop.f32.mrb[0].mxu1 }
 0x147   : > { %v333_v8 = vpack.c.bf16 %v326_v7, %v326_v7  ;;  %v328_v9 = vpop.f32.mrb[1].mxu1 }
 0x148   : > { %v2670_v10 = vpack.c.bf16 %v328_v9, %v328_v9  ;;  %v330_v11 = vpop.f32.mrb[2].mxu1 }
 0x149   : > { %336 = vst.msk [vmem:[#allocation2] sm:$0xf] %vm335_vm1, %v333_v8  ;;  %345 = vrot.lane.b32.xlu1 %v333_v8, %s2424_s21  ;;  %340 = vrot.lane.b32.xlu0 %v333_v8, %s2425_s23  ;;  %v331_v12 = vpop.f32.mrb[3].mxu1 }
 0x14a   : > { %344 = vst.msk [vmem:[#allocation4] sm:$0xf] %vm335_vm1, %v2670_v10 }
 0x14d   : > { %383 = vrot.lane.b32.xlu1 %v333_v8, %s2427_s7  ;;  %350 = vrot.lane.b32.xlu0 %v333_v8, %s2428_s8 }
 0x150   : > { %v393_v25 = vld [vmem:[#allocation2] sm:$0xf] }
 0x151   : > { %368 = vrot.lane.b32.xlu1 %v333_v8, %s2429_s30  ;;  %378 = vrot.lane.b32.xlu0 %v333_v8, %s2430_s6  ;;  %v401_v31 = vld [vmem:[#allocation4] sm:$0xf] }
 0x152   : > { %v644_v33 = vsel %vm642_vm4, %v401_v31, 0 }
 0x155   : > { %363 = vrot.lane.b32.xlu0 %v333_v8, %s2431_s9 }
 0x1bb   : > { %v346_v13 = vpop.permute.xlu1 %345  ;;  %v341_v14 = vpop.permute.xlu0 %340 }
 0x1bc   : > { %349 = vst.msk [vmem:[#allocation2 + $0x4] sm:$0xf] %vm335_vm1, %v346_v13  ;;  %343 = vst.msk [vmem:[#allocation3] sm:$0xf] %vm335_vm1, %v341_v14 }
 0x1bf   : > { %v384_v15 = vpop.permute.xlu1 %383  ;;  %v351_v16 = vpop.permute.xlu0 %350 }
 0x1c0   : > { %387 = vst.msk [vmem:[#allocation3 + $0xc] sm:$0xf] %vm335_vm1, %v384_v15  ;;  %354 = vst.msk [vmem:[#allocation3 + $0x4] sm:$0xf] %vm335_vm1, %v351_v16 }
 0x1c3   : > { %v369_v17 = vpop.permute.xlu1 %368  ;;  %v379_v18 = vpop.permute.xlu0 %378  ;;  %v397_v19 = vld [vmem:[#allocation3] sm:$0xf]  ;;  %v394_v29 = vld [vmem:[#allocation2 + $0x4] sm:$0xf] }
 0x1c4   : > { %372 = vst.msk [vmem:[#allocation3 + $0x8] sm:$0xf] %vm335_vm1, %v369_v17  ;;  %382 = vst.msk [vmem:[#allocation2 + $0xc] sm:$0xf] %vm335_vm1, %v379_v18  ;;  %v410_v20 = vsel %vm405_vm3, %v397_v19, 0 }
 0x1c5   : > { %1964 = vmatpush3.bf16.xpose.msra.mxu1 %v410_v20 }
 0x1c6   : > { %1969 = vmatprep.subr.bf16.mxu1 %v2423_v6 }
 0x1c7   : > { %v364_v21 = vpop.permute.xlu0 %363  ;;  %v400_v22 = vld [vmem:[#allocation3 + $0xc] sm:$0xf]  ;;  %v398_v24 = vld [vmem:[#allocation3 + $0x4] sm:$0xf] }
 0x1c8   : > { %367 = vst.msk [vmem:[#allocation2 + $0x8] sm:$0xf] %vm335_vm1, %v364_v21  ;;  %v548_v23 = vsel %vm405_vm3, %v400_v22, 0  ;;  %v456_v26 = vsel %vm405_vm3, %v398_v24, 0 }
 0x1c9   : > { %1982 = vmatpush3.bf16.xpose.msra.mxu0 %v548_v23 }
 0x1ca   : > { %1993 = vmatprep.subr.bf16.mxu0 %v2423_v6 }
 0x1cb   : > { %v396_v27 = vld [vmem:[#allocation2 + $0xc] sm:$0xf]  ;;  %v399_v28 = vld [vmem:[#allocation3 + $0x8] sm:$0xf] }
 0x1cc   : > { %1966 = vmatmul.mubr.msk.bf16.vlgmr.msra.gmra.mrb[4].mxu1 %vm405_vm3, %v393_v25  ;;  %v502_v30 = vsel %vm405_vm3, %v399_v28, 0 }
 0x1cd   : > { %1970 = vmatpush3.bf16.xpose.msra.mxu1 %v456_v26  ;;  %1971 = vmatprep.mubr.msk.bf16.mxu1 %vm2426_vm2, %v2423_v6 }
 0x1ce   : > { %1975 = vmatprep.subr.bf16.mxu1 %v2423_v6 }
 0x1cf   : > { %v395_v32 = vld [vmem:[#allocation2 + $0x8] sm:$0xf] }
 0x1d0   : > { %1984 = vmatmul.mubr.msk.bf16.vlgmr.msra.gmra.mrb[0].mxu0 %vm405_vm3, %v396_v27 }
 0x1d1   : > { %1995 = vmatprep.mubr.msk.bf16.mxu0 %vm2426_vm2, %v2423_v6 }
 0x1d4   : > { %1972 = vmatmul.mubr.msk.bf16.vlgmr.msra.gmra.mrb[8].mxu1 %vm405_vm3, %v394_v29 }
 0x1d5   : > { %1976 = vmatpush3.bf16.xpose.msra.mxu1 %v502_v30  ;;  %1977 = vmatprep.mubr.msk.bf16.mxu1 %vm2426_vm2, %v2423_v6 }
 0x1d6   : > { %1987 = vmatprep.subr.bf16.mxu1 %v2423_v6 }
 0x1dc   : > { %1978 = vmatmul.mubr.msk.bf16.vlgmr.msra.gmra.mrb[12].mxu1 %vm405_vm3, %v395_v32 }
 0x1dd   : > { %1988 = vmatpush3.bf16.msra.mxu1 %v644_v33  ;;  %1989 = vmatprep.mubr.msk.bf16.mxu1 %vm2426_vm2, %v2423_v6 }
 0x1de   : > { %1999 = vmatprep.subr.bf16.mxu1 %v2423_v6 }
 0x29f   : > { %v446_v37 = vpop.f32.mrb[4].mxu1 }
 0x2a0   : > { %v1967_v38 = vpop.f32.mrb[5].mxu1  ;;  %v447_v46 = vadd.f32 %v446_v37, %v2716_v41 }
 0x2a1   : > { %v449_v39 = vpop.f32.mrb[6].mxu1  ;;  %v1887_v38 = vld [vmem:[%s2643_s25 + $0x4] sm:$0xf]  ;;  %s2343_s25 = scalar_lea.vmem %s2910_s5, 128 }
 0x2a2   : > { %v1968_v40 = vpop.f32.mrb[7].mxu1  ;;  %v591_v54 = vsel %vm590_vm6, %v447_v46, -inf  ;;  %p2344_p11 = scmp.ne.s32.totalorder %s2910_s5, %s2343_s25 }
 0x2a3   : > { %v584_v42 = vpop.f32.mrb[0].mxu0 }
 0x2a4   : > { %v585_v43 = vadd.f32 %v584_v42, %v2716_v41  ;;  %v1985_v44 = vpop.f32.mrb[1].mxu0  ;;  %p2345_p1 = pnand %p2344_p11, %p2976_p0 }
 0x2a5   : > { %v587_v45 = vpop.f32.mrb[2].mxu0 }
 0x2a6   : > { %v1986_v47 = vpop.f32.mrb[3].mxu0  ;;  %v600_v48 = vsel %vm590_vm6, %v585_v43, -inf  ;;  %v2761_v45 = vld [vmem:[#allocation10] sm:$0xff]   ;;  %p2346_p3 = pneg %p2345_p1 }
 0x2a7   : > { %601 = vmax.xlane.f32.xlu0 %v600_v48  ;;  %v492_v49 = vpop.f32.mrb[8].mxu1 }
 0x2a8   : > { %v493_v50 = vadd.f32 %v492_v49, %v2716_v41  ;;  %v1973_v51 = vpop.f32.mrb[9].mxu1 }
 0x2a9   : > { %v495_v52 = vpop.f32.mrb[10].mxu1 }
 0x2aa   : > { %v1974_v53 = vpop.f32.mrb[11].mxu1  ;;  %v594_v55 = vsel %vm590_vm6, %v493_v50, -inf }
 0x2ab   : > { %592 = vmax.xlane.f32.xlu0 %v591_v54  ;;  %595 = vmax.xlane.f32.xlu1 %v594_v55 }
 0x2af   : > { %v538_v56 = vpop.f32.mrb[12].mxu1 }
 0x2b0   : > { %v1979_v57 = vpop.f32.mrb[13].mxu1  ;;  %v539_v9 = vadd.f32 %v538_v56, %v2716_v41 }
 0x2b1   : > { %v541_v58 = vpop.f32.mrb[14].mxu1 }
 0x2b2   : > { %v1980_v59 = vpop.f32.mrb[15].mxu1  ;;  %v597_v13 = vsel %vm590_vm6, %v539_v9, -inf }
 0x334   : > { %v602_v60 = vpop.xlane.xlu0 %601 }
 0x335   : > { %v606_v61 = vsub.f32 %v585_v43, %v602_v60 }
 0x337   : > { %v613_v62 = vmul.f32 1.442695, %v606_v61 }
 0x338   : > { %v596_v63 = vpop.xlane.xlu1 %595  ;;  %v593_v15 = vpop.xlane.xlu0 %592 }
 0x339   : > { %2225 = vpow2.f32 %v613_v62  ;;  %v604_v5 = vsub.f32 %v493_v50, %v596_v63  ;;  %v603_v16 = vsub.f32 %v447_v46, %v593_v15  ;;  %v2782_v62 = vld [vmem:[#allocation10 + $0x8] sm:$0xff]  }
 0x33b   : > { %v609_v7 = vmul.f32 1.442695, %v604_v5  ;;  %v607_v17 = vmul.f32 1.442695, %v603_v16 }
 0x33d   : > { %2227 = vpow2.f32 %v609_v7 }
 0x33e   : > { %2229 = vpow2.f32 %v607_v17 }
 0x343   : > { %v2226_v8 = vpop.eup %2225 }
 0x344   : > { %v624_v11 = vsel %vm590_vm6, %v2226_v8, 0.0 }
 0x345   : > { %625 = vadd.xlane.f32.xlu0 %v624_v11 }
 0x347   : > { %v2228_v12 = vpop.eup %2227 }
 0x348   : > { %v618_v14 = vsel %vm590_vm6, %v2228_v12, 0.0  ;;  %v2230_v18 = vpop.eup %2229 }
 0x349   : > { %598 = vmax.xlane.f32.xlu0 %v597_v13  ;;  %619 = vadd.xlane.f32.xlu1 %v618_v14  ;;  %v615_v19 = vsel %vm590_vm6, %v2230_v18, 0.0 }
 0x35a   : > { %358 = vrot.lane.b32.xlu1 %v2670_v10, %s2424_s21 }
 0x35f   : > { %388 = vrot.lane.b32.xlu0 %v2670_v10, %s2430_s6 }
 0x37e   : > { %616 = vadd.xlane.f32.xlu1 %v615_v19 }
 0x38f   : > { %373 = vrot.lane.b32.xlu1 %v2670_v10, %s2431_s9 }
 0x3d2   : > { %v626_v20 = vpop.xlane.xlu0 %625 }
 0x3d6   : > { %v599_v21 = vpop.xlane.xlu0 %598  ;;  %v620_v22 = vpop.xlane.xlu1 %619 }
 0x3d7   : > { %v605_v23 = vsub.f32 %v539_v9, %v599_v21  ;;  %2231 = vrcp.f32 %v620_v22  ;;  %v2789_v9 = vld [vmem:[#allocation10 + $0x10] sm:$0xff]  }
 0x3d9   : > { %v611_v24 = vmul.f32 1.442695, %v605_v23 }
 0x3da   : > { %v389_v25 = vpop.permute.xlu0 %388  ;;  %v359_v26 = vpop.permute.xlu1 %358 }
 0x3db   : > { %2233 = vpow2.f32 %v611_v24  ;;  %392 = vst.msk [vmem:[#allocation4 + $0xc] sm:$0xf] %vm335_vm1, %v389_v25  ;;  %362 = vst.msk [vmem:[#allocation4 + $0x4] sm:$0xf] %vm335_vm1, %v359_v26  ;;  %v2810_v26 = vld [vmem:[#allocation10 + $0x18] sm:$0xff]  }
 0x3dc   : > { %2235 = vrcp.f32 %v626_v20 }
 0x3e1   : > { %v2232_v27 = vpop.eup %2231 }
 0x3e2   : > { %v632_v28 = vmul.f32 %v2232_v27, %v2228_v12  ;;  %v402_v29 = vld [vmem:[#allocation4 + $0x4] sm:$0xf]  ;;  %v404_v32 = vld [vmem:[#allocation4 + $0xc] sm:$0xf] }
 0x3e3   : > { %v690_v30 = vsel %vm642_vm4, %v402_v29, 0  ;;  %v782_v35 = vsel %vm642_vm4, %v404_v32, 0 }
 0x3e4   : > { %1994 = vmatpush3.bf16.msra.mxu0 %v690_v30  ;;  %v636_v31 = vpack.c.bf16 %v632_v28, %v632_v28 }
 0x3e5   : > { %v2234_v10 = vpop.eup %2233  ;;  %2005 = vmatprep.subr.bf16.mxu0 %v2423_v6 }
 0x3e6   : > { %v621_v33 = vsel %vm590_vm6, %v2234_v10, 0.0  ;;  %v2236_v34 = vpop.eup %2235 }
 0x3e7   : > { %622 = vadd.xlane.f32.xlu0 %v621_v33  ;;  %1996 = vmatmul.mubr.msk.bf16.vlgmr.msra.gmra.mrb[4].mxu0 %vm590_vm6, %v636_v31  ;;  %v634_v36 = vmul.f32 %v2236_v34, %v2226_v8 }
 0x3e8   : > { %2006 = vmatpush3.bf16.msra.mxu0 %v782_v35  ;;  %2007 = vmatprep.mubr.msk.bf16.mxu0 %vm2426_vm2, %v2423_v6 }
 0x3e9   : > { %1042 = vmatprep.subr.bf16.mxu0 %v2654_v1  ;;  %v638_v37 = vpack.c.bf16 %v634_v36, %v634_v36 }
 0x3ef   : > { %2008 = vmatmul.mubr.msk.bf16.vlgmr.msra.gmra.mrb[8].mxu0 %vm590_vm6, %v638_v37 }
 0x3f0   : > { %1043 = vmatpush1.bf16.msra.mxu0 %v2656_v2  ;;  %1074 = vmatprep.mubr.bf16.mxu0 %v2422_v0 }
 0x3f1   : > { %1044 = vmatprep.subr.bf16.mxu0 %v2659_v3 }
 0x3f4   : > { %1045 = vmatpush1.bf16.msra.mxu0 %v2661_v4 }
 0x3f5   : > { %2035 = vmatprep.subr.bf16.mxu0 %v2423_v6 }
 0x3f7   : > { %1888 = vmatmul.mubr.msk.bf16.vlgmr.msra.gmra.mrb[12].mxu0 %vm288_vm0, %v1887_v38 }
 0x3f8   : > { %2037 = vmatprep.mubr.msk.bf16.mxu0 %vm2426_vm2, %v2423_v6 }
 0x40b   : > { %v617_v1 = vpop.xlane.xlu1 %616 }
 0x40c   : > { %2237 = vrcp.f32 %v617_v1 }
 0x40f   : > { %v374_v39 = vpop.permute.xlu1 %373 }
 0x410   : > { %377 = vst.msk [vmem:[#allocation4 + $0x8] sm:$0xf] %vm335_vm1, %v374_v39 }
 0x416   : > { %v2238_v2 = vpop.eup %2237 }
 0x417   : > { %v631_v40 = vmul.f32 %v2238_v2, %v2230_v18  ;;  %v403_v0 = vld [vmem:[#allocation4 + $0x8] sm:$0xf] }
 0x418   : > { %v736_v3 = vsel %vm642_vm4, %v403_v0, 0 }
 0x419   : > { %v635_v42 = vpack.c.bf16 %v631_v40, %v631_v40 }
 0x41b   : > { %1990 = vmatmul.mubr.msk.bf16.vlgmr.msra.gmra.mrb[16].mxu1 %vm590_vm6, %v635_v42 }
 0x41c   : > { %2000 = vmatpush3.bf16.msra.mxu1 %v736_v3  ;;  %2001 = vmatprep.mubr.msk.bf16.mxu1 %vm2426_vm2, %v2423_v6 }
 0x41d   : > { %2011 = vmatprep.subr.bf16.mxu1 %v2423_v6 }
 0x474   : > { %v623_v4 = vpop.xlane.xlu0 %622 }
 0x475   : > { %2239 = vrcp.f32 %v623_v4 }
 0x47f   : > { %v2240_v43 = vpop.eup %2239 }
 0x480   : > { %v633_v44 = vmul.f32 %v2240_v43, %v2234_v10 }
 0x482   : > { %v637_v46 = vpack.c.bf16 %v633_v44, %v633_v44 }
 0x484   : > { %2002 = vmatmul.mubr.msk.bf16.vlgmr.msra.gmra.mrb[20].mxu1 %vm590_vm6, %v637_v46 }
 0x485   : > { %2012 = vmatpush3.bf16.msra.mxu1 %v2761_v45  ;;  %2013 = vmatprep.mubr.msk.bf16.mxu1 %vm2426_vm2, %v2423_v6 }
 0x486   : > { %2017 = vmatprep.subr.bf16.mxu1 %v2423_v6 }
 0x4ba   : > { %v726_v47 = vpop.f32.mrb[4].mxu0 }
 0x4bb   : > { %v1997_v48 = vpop.f32.mrb[5].mxu0  ;;  %v825_v11 = vpack.c.bf16 %v726_v47, %v726_v47 }
 0x4bc   : > { %v729_v49 = vpop.f32.mrb[6].mxu0 }
 0x4bd   : > { %v1998_v50 = vpop.f32.mrb[7].mxu0 }
 0x4c2   : > { %v2768_v51 = vpop.f32.mrb[8].mxu0 }
 0x4c3   : > { %v2009_v52 = vpop.f32.mrb[9].mxu0  ;;  %v827_v36 = vpack.c.bf16 %v2768_v51, %v2768_v51 }
 0x4c4   : > { %v821_v53 = vpop.f32.mrb[10].mxu0 }
 0x4c5   : > { %v2010_v54 = vpop.f32.mrb[11].mxu0 }
 0x4c6   : > { %v2846_v54 = vld [vmem:[%s2961_s3] ss:$0 sm:$0xff] }
 0x4ca   : > { %v1076_v55 = vpop.f32.mrb[12].mxu0 }
 0x4cb   : > { %v1083_v56 = vpack.c.bf16 %v1076_v55, %v1076_v55  ;;  %v1078_v57 = vpop.f32.mrb[13].mxu0 }
 0x4cc   : > { %v2770_v58 = vpack.c.bf16 %v1078_v57, %v1078_v57  ;;  %v1080_v59 = vpop.f32.mrb[14].mxu0 }
 0x4cd   : > { %1085 = vst.msk [vmem:[#allocation2] sm:$0xf] %vm335_vm1, %v1083_v56  ;;  %1089 = vrot.lane.b32.xlu0 %v1083_v56, %s2425_s23  ;;  %1098 = vrot.lane.b32.xlu1 %v1083_v56, %s2428_s8  ;;  %v1081_v60 = vpop.f32.mrb[15].mxu0 }
 0x4ce   : > { %1093 = vst.msk [vmem:[#allocation4] sm:$0xf] %vm335_vm1, %v2770_v58 }
 0x4d1   : > { %1094 = vrot.lane.b32.xlu1 %v1083_v56, %s2424_s21  ;;  %1109 = vrot.lane.b32.xlu0 %v1083_v56, %s2431_s9 }
 0x4d4   : > { %v1133_v23 = vld [vmem:[#allocation2] sm:$0xf] }
 0x4d5   : > { %1113 = vrot.lane.b32.xlu1 %v1083_v56, %s2429_s30  ;;  %1121 = vrot.lane.b32.xlu0 %v1083_v56, %s2430_s6  ;;  %v1141_v32 = vld [vmem:[#allocation4] sm:$0xf] }
 0x4d6   : > { %v1381_v34 = vsel %vm642_vm4, %v1141_v32, 0 }
 0x4d9   : > { %1125 = vrot.lane.b32.xlu1 %v1083_v56, %s2427_s7 }
 0x4ee   : > { %v680_v61 = vpop.f32.mrb[16].mxu1 }
 0x4ef   : > { %v824_v63 = vpack.c.bf16 %v680_v61, %v680_v61  ;;  %v1991_v5 = vpop.f32.mrb[17].mxu1 }
 0x4f0   : > { %v683_v7 = vpop.f32.mrb[18].mxu1 }
 0x4f1   : > { %v1992_v8 = vpop.f32.mrb[19].mxu1  ;;  %2014 = vmatmul.mubr.msk.bf16.vlgmr.msra.gmra.mrb[24].mxu1 %vm405_vm3, %v824_v63 }
 0x4f2   : > { %2018 = vmatpush3.bf16.msra.mxu1 %v2782_v62  ;;  %2019 = vmatprep.mubr.msk.bf16.mxu1 %vm2426_vm2, %v2423_v6 }
 0x4f3   : > { %2023 = vmatprep.subr.bf16.mxu1 %v2423_v6 }
 0x4fd   : > { %2020 = vmatmul.mubr.msk.bf16.vlgmr.msra.gmra.mrb[24].mxu1 %vm405_vm3, %v825_v11 }
 0x4fe   : > { %2024 = vmatpush3.bf16.msra.mxu1 %v2789_v9  ;;  %2025 = vmatprep.mubr.msk.bf16.mxu1 %vm2426_vm2, %v2423_v6 }
 0x4ff   : > { %2029 = vmatprep.subr.bf16.mxu1 %v2423_v6 }
 0x53f   : > { %v1090_v12 = vpop.permute.xlu0 %1089  ;;  %v1099_v13 = vpop.permute.xlu1 %1098 }
 0x540   : > { %1092 = vst.msk [vmem:[#allocation3] sm:$0xf] %vm335_vm1, %v1090_v12  ;;  %1101 = vst.msk [vmem:[#allocation3 + $0x4] sm:$0xf] %vm335_vm1, %v1099_v13 }
 0x543   : > { %v1095_v14 = vpop.permute.xlu1 %1094  ;;  %v1110_v15 = vpop.permute.xlu0 %1109 }
 0x544   : > { %1097 = vst.msk [vmem:[#allocation2 + $0x4] sm:$0xf] %vm335_vm1, %v1095_v14  ;;  %1112 = vst.msk [vmem:[#allocation2 + $0x8] sm:$0xf] %vm335_vm1, %v1110_v15 }
 0x547   : > { %v1114_v16 = vpop.permute.xlu1 %1113  ;;  %v1137_v17 = vld [vmem:[#allocation3] sm:$0xf]  ;;  %v1122_v18 = vpop.permute.xlu0 %1121  ;;  %v1138_v21 = vld [vmem:[#allocation3 + $0x4] sm:$0xf] }
 0x548   : > { %1116 = vst.msk [vmem:[#allocation3 + $0x8] sm:$0xf] %vm335_vm1, %v1114_v16  ;;  %v1149_v19 = vsel %vm405_vm3, %v1137_v17, 0  ;;  %1124 = vst.msk [vmem:[#allocation2 + $0xc] sm:$0xf] %vm335_vm1, %v1122_v18  ;;  %v1195_v22 = vsel %vm405_vm3, %v1138_v21, 0 }
 0x549   : > { %2036 = vmatpush3.bf16.xpose.msra.mxu0 %v1149_v19 }
 0x54a   : > { %2041 = vmatprep.subr.bf16.mxu0 %v2423_v6 }
 0x54b   : > { %v1126_v20 = vpop.permute.xlu1 %1125  ;;  %v1134_v29 = vld [vmem:[#allocation2 + $0x4] sm:$0xf]  ;;  %v1135_v33 = vld [vmem:[#allocation2 + $0x8] sm:$0xf] }
 0x54c   : > { %1128 = vst.msk [vmem:[#allocation3 + $0xc] sm:$0xf] %vm335_vm1, %v1126_v20 }
 0x54f   : > { %v1139_v24 = vld [vmem:[#allocation3 + $0x8] sm:$0xf]  ;;  %v1136_v38 = vld [vmem:[#allocation2 + $0xc] sm:$0xf] }
 0x550   : > { %2038 = vmatmul.mubr.msk.bf16.vlgmr.msra.gmra.mrb[16].mxu0 %vm405_vm3, %v1133_v23  ;;  %v1241_v10 = vsel %vm405_vm3, %v1139_v24, 0 }
 0x551   : > { %2042 = vmatpush3.bf16.xpose.msra.mxu0 %v1195_v22  ;;  %2043 = vmatprep.mubr.msk.bf16.mxu0 %vm2426_vm2, %v2423_v6 }
 0x552   : > { %2047 = vmatprep.subr.bf16.mxu0 %v2423_v6 }
 0x553   : > { %v1140_v35 = vld [vmem:[#allocation3 + $0xc] sm:$0xf] }
 0x554   : > { %v1287_v37 = vsel %vm405_vm3, %v1140_v35, 0 }
 0x557   : > { %v772_v25 = vpop.f32.mrb[20].mxu1 }
 0x558   : > { %v826_v27 = vpack.c.bf16 %v772_v25, %v772_v25  ;;  %v2003_v28 = vpop.f32.mrb[21].mxu1  ;;  %2044 = vmatmul.mubr.msk.bf16.vlgmr.msra.gmra.mrb[20].mxu0 %vm405_vm3, %v1134_v29 }
 0x559   : > { %v775_v30 = vpop.f32.mrb[22].mxu1  ;;  %2048 = vmatpush3.bf16.xpose.msra.mxu0 %v1241_v10  ;;  %2049 = vmatprep.mubr.msk.bf16.mxu0 %vm2426_vm2, %v2423_v6 }
 0x55a   : > { %v2004_v31 = vpop.f32.mrb[23].mxu1  ;;  %2026 = vmatmul.mubr.msk.bf16.vlgmr.msra.gmra.mrb[24].mxu1 %vm405_vm3, %v826_v27  ;;  %2059 = vmatprep.subr.bf16.mxu0 %v2423_v6 }
 0x55b   : > { %2030 = vmatpush3.bf16.msra.mxu1 %v2810_v26  ;;  %2031 = vmatprep.mubr.msk.bf16.mxu1 %vm2426_vm2, %v2423_v6 }
 0x55c   : > { %2053 = vmatprep.subr.bf16.mxu1 %v2423_v6 }
 0x560   : > { %2050 = vmatmul.mubr.msk.bf16.vlgmr.msra.gmra.mrb[24].mxu0 %vm405_vm3, %v1135_v33 }
 0x561   : > { %2060 = vmatpush3.bf16.msra.mxu0 %v1381_v34  ;;  %2061 = vmatprep.mubr.msk.bf16.mxu0 %vm2426_vm2, %v2423_v6 }
 0x562   : > { %2071 = vmatprep.subr.bf16.mxu0 %v2423_v6 }
 0x566   : > { %2032 = vmatmul.mubr.msk.bf16.vlgmr.msra.gmra.mrb[24].mxu1 %vm405_vm3, %v827_v36 }
 0x567   : > { %2054 = vmatpush3.bf16.xpose.msra.mxu1 %v1287_v37  ;;  %2055 = vmatprep.mubr.msk.bf16.mxu1 %vm2426_vm2, %v2423_v6 }
 0x568   : > { %2065 = vmatprep.subr.bf16.mxu1 %v2423_v6 }
 0x56e   : > { %2056 = vmatmul.mubr.msk.bf16.vlgmr.msra.gmra.mrb[28].mxu1 %vm405_vm3, %v1136_v38 }
 0x56f   : > { %2067 = vmatprep.mubr.msk.bf16.mxu1 %vm2426_vm2, %v2423_v6 }
 0x623   : > { %v1185_v1 = vpop.f32.mrb[16].mxu0 }
 0x624   : > { %v1186_v39 = vadd.f32 %v1185_v1, %v2716_v41  ;;  %v2039_v2 = vpop.f32.mrb[17].mxu0 }
 0x625   : > { %v1188_v40 = vpop.f32.mrb[18].mxu0 }
 0x626   : > { %v2040_v0 = vpop.f32.mrb[19].mxu0  ;;  %v1329_v42 = vsel %vm590_vm6, %v1186_v39, -inf }
 0x627   : > { %1330 = vmax.xlane.f32.xlu1 %v1329_v42 }
 0x62b   : > { %v1231_v3 = vpop.f32.mrb[20].mxu0 }
 0x62c   : > { %v1232_v4 = vadd.f32 %v1231_v3, %v2716_v41  ;;  %v2045_v43 = vpop.f32.mrb[21].mxu0 }
 0x62d   : > { %v1234_v44 = vpop.f32.mrb[22].mxu0 }
 0x62e   : > { %v2046_v46 = vpop.f32.mrb[23].mxu0  ;;  %v1332_v47 = vsel %vm590_vm6, %v1232_v4, -inf }
 0x62f   : > { %1333 = vmax.xlane.f32.xlu0 %v1332_v47 }
 0x633   : > { %v1277_v48 = vpop.f32.mrb[24].mxu0 }
 0x634   : > { %v1278_v49 = vadd.f32 %v1277_v48, %v2716_v41  ;;  %v2051_v50 = vpop.f32.mrb[25].mxu0 }
 0x635   : > { %v1280_v51 = vpop.f32.mrb[26].mxu0 }
 0x636   : > { %v2052_v52 = vpop.f32.mrb[27].mxu0  ;;  %v1335_v53 = vsel %vm590_vm6, %v1278_v49, -inf }
 0x637   : > { %1336 = vmax.xlane.f32.xlu0 %v1335_v53 }
 0x639   : > { %v1018_v55 = vpop.f32.mrb[24].mxu1 }
 0x63a   : > { %v2107_v56 = vadd.f32 %v2846_v54, %v1018_v55  ;;  %v2033_v57 = vpop.f32.mrb[25].mxu1 }
 0x63b   : > { %v1021_v59 = vpop.f32.mrb[26].mxu1 }
 0x63c   : > { %v1034_v60 = vpack.c.bf16 %v2107_v56, %v2107_v56  ;;  %v2034_v61 = vpop.f32.mrb[27].mxu1 }
 0x63e   : > { %1036 = vst.msk [vmem:[%s2851_s20] sm:$0xf] %vm1035_vm7, %v1034_v60 }
 0x641   : > { %v1323_v63 = vpop.f32.mrb[28].mxu1 }
 0x642   : > { %v1324_v5 = vadd.f32 %v1323_v63, %v2716_v41  ;;  %v2057_v7 = vpop.f32.mrb[29].mxu1 }
 0x643   : > { %v1326_v8 = vpop.f32.mrb[30].mxu1 }
 0x644   : > { %v2058_v11 = vpop.f32.mrb[31].mxu1  ;;  %v1338_v12 = vsel %vm590_vm6, %v1324_v5, -inf }
 0x645   : > { %1339 = vmax.xlane.f32.xlu1 %v1338_v12 }
 0x6b4   : > { %v1331_v13 = vpop.xlane.xlu1 %1330 }
 0x6b5   : > { %v1341_v14 = vsub.f32 %v1186_v39, %v1331_v13 }
 0x6b7   : > { %v1345_v15 = vmul.f32 1.442695, %v1341_v14 }
 0x6b9   : > { %2241 = vpow2.f32 %v1345_v15 }
 0x6bc   : > { %v1334_v16 = vpop.xlane.xlu0 %1333 }
 0x6bd   : > { %v1342_v17 = vsub.f32 %v1232_v4, %v1334_v16 }
 0x6bf   : > { %v1347_v18 = vmul.f32 1.442695, %v1342_v17 }
 0x6c1   : > { %2243 = vpow2.f32 %v1347_v18 }
 0x6c3   : > { %v2242_v19 = vpop.eup %2241 }
 0x6c4   : > { %v1353_v20 = vsel %vm590_vm6, %v2242_v19, 0.0  ;;  %v1337_v22 = vpop.xlane.xlu0 %1336 }
 0x6c5   : > { %1354 = vadd.xlane.f32.xlu0 %v1353_v20  ;;  %v1343_v23 = vsub.f32 %v1278_v49, %v1337_v22 }
 0x6c7   : > { %v1349_v27 = vmul.f32 1.442695, %v1343_v23 }
 0x6cb   : > { %v2244_v21 = vpop.eup %2243 }
 0x6cc   : > { %v1356_v41 = vsel %vm590_vm6, %v2244_v21, 0.0 }
 0x6cd   : > { %1357 = vadd.xlane.f32.xlu1 %v1356_v41 }
 0x6d2   : > { %v1340_v24 = vpop.xlane.xlu1 %1339 }
 0x6d3   : > { %v1344_v25 = vsub.f32 %v1324_v5, %v1340_v24 }
 0x6d5   : > { %v1351_v28 = vmul.f32 1.442695, %v1344_v25 }
 0x6d7   : > { %2245 = vpow2.f32 %v1351_v28 }
 0x6d8   : > { %2247 = vpow2.f32 %v1349_v27 }
 0x6de   : > { %1105 = vrot.lane.b32.xlu1 %v2770_v58, %s2424_s21  ;;  %s2432_s21 = smov [#allocation11]  }
 0x6df   : > { %s2347_s7 = sshll.u32 %s2432_s21, 4  ;;  %s2348_s7 = int_to_ptr.vmem [resolvable:$false] %s2347_s7 }
 0x6e0   : > { %s2349_s8 = scalar_lea.vmem %s2348_s7, 256  ;;  %p2350_p5 = scmp.lt.s32.totalorder %s2910_s5, %s2348_s7 }
 0x6e1   : > { %v2246_v29 = vpop.eup %2245  ;;  %p2351_p9 = scmp.lt.s32.totalorder %s2349_s8, %s2343_s25 }
 0x6e2   : > { %v1362_v30 = vsel %vm590_vm6, %v2246_v29, 0.0  ;;  %v2248_v10 = vpop.eup %2247  ;;  %1129 = vrot.lane.b32.xlu1 %v2770_v58, %s2430_s6 }
 0x6e3   : > { %1363 = vadd.xlane.f32.xlu0 %v1362_v30  ;;  %v1359_v31 = vsel %vm590_vm6, %v2248_v10, 0.0  ;;  %p2352_p12 = por %p2351_p9, %p2350_p5 }
 0x6e5   : > { %p2353_p2 = pnand %p2352_p12, %p2346_p3 }
 0x6e7   : > { %1360 = vadd.xlane.f32.xlu0 %v1359_v31 }
 0x6fd   : > { %1117 = vrot.lane.b32.xlu0 %v2770_v58, %s2431_s9 }
 0x752   : > { %v1355_v32 = vpop.xlane.xlu0 %1354 }
 0x753   : > { %2249 = vrcp.f32 %v1355_v32 }
 0x75a   : > { %v1358_v33 = vpop.xlane.xlu1 %1357 }
 0x75b   : > { %2251 = vrcp.f32 %v1358_v33 }
 0x75d   : > { %v2250_v34 = vpop.eup %2249 }
 0x75e   : > { %v1369_v35 = vmul.f32 %v2250_v34, %v2242_v19  ;;  %v1106_v36 = vpop.permute.xlu1 %1105 }
 0x75f   : > { %1108 = vst.msk [vmem:[#allocation4 + $0x4] sm:$0xf] %vm335_vm1, %v1106_v36 }
 0x760   : > { %v1373_v37 = vpack.c.bf16 %v1369_v35, %v1369_v35 }
 0x762   : > { %2062 = vmatmul.mubr.msk.bf16.vlgmr.msra.gmra.mrb[28].mxu0 %vm590_vm6, %v1373_v37  ;;  %v1130_v38 = vpop.permute.xlu1 %1129 }
 0x763   : > { %1132 = vst.msk [vmem:[#allocation4 + $0xc] sm:$0xf] %vm335_vm1, %v1130_v38  ;;  %2073 = vmatprep.mubr.msk.bf16.mxu0 %vm2426_vm2, %v2423_v6 }
 0x765   : > { %v2252_v1 = vpop.eup %2251 }
 0x766   : > { %v1370_v58 = vmul.f32 %v2252_v1, %v2244_v21  ;;  %v1142_v39 = vld [vmem:[#allocation4 + $0x4] sm:$0xf] }
 0x767   : > { %v1427_v2 = vsel %vm642_vm4, %v1142_v39, 0 }
 0x768   : > { %2066 = vmatpush3.bf16.msra.mxu1 %v1427_v2  ;;  %v1374_v40 = vpack.c.bf16 %v1370_v58, %v1370_v58 }
 0x769   : > { %2077 = vmatprep.subr.bf16.mxu1 %v2423_v6 }
 0x76a   : > { %v1144_v0 = vld [vmem:[#allocation4 + $0xc] sm:$0xf] }
 0x76b   : > { %2068 = vmatmul.mubr.msk.bf16.vlgmr.msra.gmra.mrb[32].mxu1 %vm590_vm6, %v1374_v40  ;;  %v1519_v42 = vsel %vm642_vm4, %v1144_v0, 0 }
 0x76c   : > { %2078 = vmatpush3.bf16.msra.mxu1 %v1519_v42  ;;  %2079 = vmatprep.mubr.msk.bf16.mxu1 %vm2426_vm2, %v2423_v6 }
 0x770   : > { %v1364_v3 = vpop.xlane.xlu0 %1363 }
 0x771   : > { %2253 = vrcp.f32 %v1364_v3 }
 0x774   : > { %v1361_v4 = vpop.xlane.xlu0 %1360 }
 0x775   : > { %2255 = vrcp.f32 %v1361_v4 }
 0x778   : > { %v1118_v43 = vpop.permute.xlu0 %1117 }
 0x779   : > { %1120 = vst.msk [vmem:[#allocation4 + $0x8] sm:$0xf] %vm335_vm1, %v1118_v43 }
 0x77b   : > { %v2254_v44 = vpop.eup %2253 }
 0x77c   : > { %v1372_v46 = vmul.f32 %v2254_v44, %v2246_v29 }
 0x77e   : > { %v1376_v47 = vpack.c.bf16 %v1372_v46, %v1372_v46 }
 0x77f   : > { %v2256_v48 = vpop.eup %2255 }
 0x780   : > { %v1371_v49 = vmul.f32 %v2256_v48, %v2248_v10  ;;  %2080 = vmatmul.mubr.msk.bf16.vlgmr.msra.gmra.mrb[36].mxu1 %vm590_vm6, %v1376_v47  ;;  %v1143_v50 = vld [vmem:[#allocation4 + $0x8] sm:$0xf] }
 0x781   : > { %v1473_v51 = vsel %vm642_vm4, %v1143_v50, 0 }
 0x782   : > { %2072 = vmatpush3.bf16.msra.mxu0 %v1473_v51  ;;  %v1375_v52 = vpack.c.bf16 %v1371_v49, %v1371_v49 }
 0x783   : > { %2083 = vmatprep.subr.bf16.mxu0 %v2423_v6 }
 0x785   : > { %2074 = vmatmul.mubr.msk.bf16.vlgmr.msra.gmra.mrb[32].mxu0 %vm590_vm6, %v1375_v52 }
 0x786   : > { %2084 = vmatpush3.bf16.msra.mxu0 %v2761_v45  ;;  %2085 = vmatprep.mubr.msk.bf16.mxu0 %vm2426_vm2, %v2423_v6 }
 0x787   : > { %2089 = vmatprep.subr.bf16.mxu0 %v2423_v6 }
 0x835   : > { %v1417_v53 = vpop.f32.mrb[28].mxu0 }
 0x836   : > { %v1561_v55 = vpack.c.bf16 %v1417_v53, %v1417_v53  ;;  %v2063_v56 = vpop.f32.mrb[29].mxu0 }
 0x837   : > { %v1420_v57 = vpop.f32.mrb[30].mxu0 }
 0x838   : > { %v2064_v59 = vpop.f32.mrb[31].mxu0  ;;  %2086 = vmatmul.mubr.msk.bf16.vlgmr.msra.gmra.mrb[36].mxu0 %vm405_vm3, %v1561_v55 }
 0x839   : > { %2090 = vmatpush3.bf16.msra.mxu0 %v2782_v62  ;;  %2091 = vmatprep.mubr.msk.bf16.mxu0 %vm2426_vm2, %v2423_v6 }
 0x83a   : > { %2095 = vmatprep.subr.bf16.mxu0 %v2423_v6 }
 0x83e   : > { %v1463_v45 = vpop.f32.mrb[32].mxu1 }
 0x83f   : > { %v2069_v60 = vpop.f32.mrb[33].mxu1  ;;  %v1562_v5 = vpack.c.bf16 %v1463_v45, %v1463_v45 }
 0x840   : > { %v1466_v61 = vpop.f32.mrb[34].mxu1 }
 0x841   : > { %v2070_v63 = vpop.f32.mrb[35].mxu1 }
 0x844   : > { %2092 = vmatmul.mubr.msk.bf16.vlgmr.msra.gmra.mrb[36].mxu0 %vm405_vm3, %v1562_v5 }
 0x845   : > { %2096 = vmatpush3.bf16.msra.mxu0 %v2789_v9  ;;  %2097 = vmatprep.mubr.msk.bf16.mxu0 %vm2426_vm2, %v2423_v6 }
 0x846   : > { %2101 = vmatprep.subr.bf16.mxu0 %v2423_v6 }
 0x853   : > { %v1555_v62 = vpop.f32.mrb[36].mxu1 }
 0x854   : > { %v2081_v7 = vpop.f32.mrb[37].mxu1  ;;  %v1564_v9 = vpack.c.bf16 %v1555_v62, %v1555_v62 }
 0x855   : > { %v1558_v8 = vpop.f32.mrb[38].mxu1 }
 0x856   : > { %v2082_v11 = vpop.f32.mrb[39].mxu1 }
 0x858   : > { %v1509_v12 = vpop.f32.mrb[32].mxu0 }
 0x859   : > { %v1563_v13 = vpack.c.bf16 %v1509_v12, %v1509_v12  ;;  %v2075_v14 = vpop.f32.mrb[33].mxu0 }
 0x85a   : > { %v1512_v15 = vpop.f32.mrb[34].mxu0 }
 0x85b   : > { %v2076_v16 = vpop.f32.mrb[35].mxu0  ;;  %2098 = vmatmul.mubr.msk.bf16.vlgmr.msra.gmra.mrb[36].mxu0 %vm405_vm3, %v1563_v13 }
 0x85c   : > { %2102 = vmatpush3.bf16.msra.mxu0 %v2810_v26  ;;  %2103 = vmatprep.mubr.msk.bf16.mxu0 %vm2426_vm2, %v2423_v6 }
 0x867   : > { %2104 = vmatmul.mubr.msk.bf16.vlgmr.msra.gmra.mrb[36].mxu0 %vm405_vm3, %v1564_v9 }
 0x93a   : > { %v1731_v17 = vpop.f32.mrb[36].mxu0 }
 0x93b   : > { %v2108_v18 = vadd.f32 %v2846_v54, %v1731_v17  ;;  %v2105_v19 = vpop.f32.mrb[37].mxu0 }
 0x93c   : > { %v1734_v20 = vpop.f32.mrb[38].mxu0 }
 0x93d   : > { %v1741_v26 = vpack.c.bf16 %v2108_v18, %v2108_v18  ;;  %v2106_v21 = vpop.f32.mrb[39].mxu0 }
 0x93f   : > { %1903 = vst.msk [vmem:[%s2851_s20 + $0x4] sm:$0xf] %vm1035_vm7, %v1741_v26 }
 0x940   : > { %2356 = shalt.err (!%p2353_p2)
}
 0x941   : > { %s2357_s30 = scalar_lea.hbm %s2908_s24, 128  ;;  %s2361_s28 = scalar_lea.hbm %s2962_s4, 256 }
 0x942   : > { %p2358_p13 = scmp.ne.s32.totalorder %s2908_s24, %s2357_s30  ;;  %p2362_p4 = scmp.lt.u32.totalorder %s2908_s24, %s2962_s4 }
 0x943   : > { %p2363_p7 = scmp.lt.u32.totalorder %s2361_s28, %s2357_s30  ;;  %p2365_p11 = scmp.lt.u32.totalorder %s2357_s30, %s2908_s24 }
 0x944   : > { %p2359_p6 = pnand %p2358_p13, %p2976_p0 }
 0x945   : > { %p2364_p8 = por %p2363_p7, %p2362_p4 }
 0x946   : > { %p2360_p10 = pneg %p2359_p6 }
 0x947   : > { %p2366_p1 = por %p2365_p11, %p2364_p8 }
 0x949   : > { %p2367_p3 = pnand %p2366_p1, %p2360_p10 }
 0x94b   : > { %2370 = shalt.err (!%p2367_p3)
}
 0x94c   : > { %s2433_s29 = smov 4  }
 0x94d   : > { %2143 = dma.vmem_to_hbm [thread:$0]  (%p2976_p0), %s2910_s5, 128, %s2908_s24, %s1745_s19, %s2425_s23, %s2425_s23, %s2433_s29  }
 0x94e PF: > { %s1773_s12 = sand.u32 1, %s2401_s15   ;;  %p2977_p5 = scmp.ne.s32.totalorder %s2967_s22, 0 }
 0x94f   : > { %p2978_p9 = scmp.ge.s32.totalorder %s2413_s18, 2  ;;  %s1774_s13 = scalar_lea.sflag [#allocation7], %s1773_s12 }
 0x951   : > { %p2157_p12 = pnand %p2978_p9, %p2977_p5 }
 0x953   : > { %2396 = dma.done.wait (!%p2157_p12), %s1774_s13, 128  }
 0x954   : > { %2398 = vsyncadd (!%p2157_p12), %s1774_s13, 4294967168  ;;  %p18_p2 = scmp.ge.s32.totalorder %s2572_s11, 4   ;;  %s2979_s15 = smov %s2405_s16 }
 0x955   : > { %s2980_s16 = smov %s2409_s17  ;;  %s2981_s17 = smov %s2581_s14 }
 0x956   : > { %s2982_s18 = smov %s2572_s11  ;;  %20 = sbr.rel (!%p18_p2) target bundleno = 6 (0x6), region = 100 }
 0x95d   :  { %1779 = vsyncpa [#allocation6], 1 }
 0x95e   :  { %1781 = vsyncpa [#allocation6 + $0x1], 1 }
 0x95f   :  { %1782 = vsyncpa [#allocation9], 1 }
 0x960   :  { %1783 = vsyncpa [#allocation7], 1 }
 0x961   :  { %1785 = vsyncpa [#allocation7 + $0x1], 1 }

</bundles_post_ra>
